<compile_context>
chip_gen: v7x
topology: tpu7x:2x2x1
jax: 0.10.0
libtpu: 0.0.40
codegen_flags: <defaults>
</compile_context>

<pallas_src>
import jax
import jax.numpy as jnp
from jax import lax
from jax.experimental import pallas as pl
from jax.experimental.pallas import tpu as pltpu

LN_EPS = 1e-5
GIN_EPS = 0.0


# --------------------------------------------------------------------------------------
# Kernel A: per-edge messages (edge MLP + polarity gate + gather x[src] + ReLU).
# Runs once per edge tile; independent of node tiles.
# --------------------------------------------------------------------------------------
def _edge_msg_kernel(src_ref, ea_ref, xg_ref,
                     we1_ref, be1_ref, w23_ref, b23_ref, blin_ref,
                     msg_ref):
    te = ea_ref.shape[0]
    n_all = xg_ref.shape[0]

    # ---- edge MLP with polarity gate (we2@wlin fused into w23/b23 in the wrapper) ------
    ea = ea_ref[...]                                             # [TE, D]  f32
    polarity = jnp.clip(ea[:, 0:1], 0.0, 1.0)                    # [TE, 1]
    raw = ea[:, 1:]                                              # [TE, D-1]
    e1 = jnp.maximum(
        jnp.dot(raw, we1_ref[...], preferred_element_type=jnp.float32) + be1_ref[...], 0.0)
    edge_emb = (polarity + 0.01) * (
        jnp.dot(e1, w23_ref[...], preferred_element_type=jnp.float32) + b23_ref[...]
    ) + blin_ref[...]                                            # [TE, Cin] f32

    # ---- gather x[src] as a bf16 one-hot matmul (one-hots are exact in bf16) -----------
    # Padded edges carry src = -1 -> no match -> contribute zero.
    onehot_src = (lax.broadcasted_iota(jnp.int32, (te, n_all), 1)
                  == src_ref[...]).astype(jnp.bfloat16)          # [TE, N]
    x_src = jnp.dot(onehot_src, xg_ref[...],
                    preferred_element_type=jnp.float32)          # [TE, Cin]

    msg_ref[...] = jnp.maximum(x_src + edge_emb, 0.0)            # [TE, Cin] f32


# --------------------------------------------------------------------------------------
# Kernel B: scatter-add of the precomputed messages + GINE node MLP.
# Grid = (node tiles "parallel", edge tiles "arbitrary"/reduction).
# --------------------------------------------------------------------------------------
def _scatter_node_kernel(dst_ref, msg_ref, xt_ref,
                         w1_ref, b1_ref, gamma_ref, beta_ref, w2_ref, b2_ref,
                         out_ref, agg_ref):
    i = pl.program_id(0)                        # node-tile index  ("parallel")
    j = pl.program_id(1)                        # edge-tile index  ("arbitrary")
    tn = agg_ref.shape[0]
    te = msg_ref.shape[0]

    @pl.when(j == 0)
    def _init():
        agg_ref[...] = jnp.zeros_like(agg_ref)

    # Scatter-add into this node tile as a minor-dim-contraction matmul.  One-hot is built
    # pre-transposed [TN, TE] (no XLU transpose) and in f32: the contraction is small, so
    # the f32 rate penalty is negligible and msg keeps full precision.
    node_ids = lax.broadcasted_iota(jnp.int32, (tn, te), 0) + i * tn
    onehot_dst = (node_ids == dst_ref[...]).astype(jnp.float32)   # [TN, TE]
    agg_ref[...] += jnp.dot(onehot_dst, msg_ref[...],
                            preferred_element_type=jnp.float32)   # [TN, Cin]

    # ---- finalize: GINE node MLP on the completed node tile ----------------------------
    @pl.when(j == pl.num_programs(1) - 1)
    def _finalize():
        h = (1.0 + GIN_EPS) * xt_ref[...] + agg_ref[...]
        h1 = jnp.dot(h, w1_ref[...], preferred_element_type=jnp.float32) + b1_ref[...]
        mean = jnp.mean(h1, axis=-1, keepdims=True)
        var = jnp.mean((h1 - mean) ** 2, axis=-1, keepdims=True)
        h1n = (h1 - mean) * lax.rsqrt(var + LN_EPS) * gamma_ref[...] + beta_ref[...]
        h2 = jnp.maximum(h1n, 0.0)
        out_ref[...] = (jnp.dot(h2, w2_ref[...], preferred_element_type=jnp.float32)
                        + b2_ref[...])


def _vmem_limit(working_set_bytes, *, floor=12 * 1024 * 1024, cap=48 * 1024 * 1024):
    """Only override the compiler's default scoped-VMEM limit when the working set
    demands it (keeps headroom for v7x's smaller 64 MiB physical VMEM)."""
    if working_set_bytes <= floor:
        return None
    return min(int(working_set_bytes * 3 // 2) + (2 << 20), cap)


def polarity_aware_conv(x, edge_index, edge_attr, params, *, tn=128, te=256):
    """x: [N, Cin] f32, edge_index: [2, E] int, edge_attr: [E, D] f32.

    Tile defaults favor v7x/v5e (tn=128 keeps >=2 node tiles on the "parallel" axis for
    v7x's two TensorCores and matches v5e's 128-wide MXU).  On a single-TC v6e, pass
    tn=256, te=512 to collapse the grids and fill the 256x256 MXU.
    """
    N, Cin = x.shape
    E = edge_index.shape[1]
    D = edge_attr.shape[1]
    H = params["we1"].shape[1]
    Cout = params["w2"].shape[1]

    # Algebraic fusion: ((e1@we2 + be2)*(p+.01)) @ wlin + blin
    #                 = (p+.01) * (e1 @ (we2@wlin) + be2@wlin) + blin
    w23 = jnp.dot(params["we2"], params["wlin"], preferred_element_type=jnp.float32)
    b23 = jnp.dot(params["be2"], params["wlin"], preferred_element_type=jnp.float32)

    n_tiles = pl.cdiv(N, tn)
    e_tiles = pl.cdiv(E, te)
    n_pad = n_tiles * tn
    e_pad = e_tiles * te

    x_f32 = jnp.pad(x.astype(jnp.float32), ((0, n_pad - N), (0, 0)))
    x_bf16 = x_f32.astype(jnp.bfloat16)                       # gather operand only (bf16)
    # Padded edges get src/dst = -1 -> one-hot compares never match -> contribute nothing.
    src = jnp.pad(edge_index[0].astype(jnp.int32), (0, e_pad - E),
                  constant_values=-1).reshape(e_pad, 1)        # column layout (gather)
    dst = jnp.pad(edge_index[1].astype(jnp.int32), (0, e_pad - E),
                  constant_values=-1).reshape(1, e_pad)        # row layout    (scatter)
    ea = jnp.pad(edge_attr.astype(jnp.float32), ((0, e_pad - E), (0, 0)))

    # -------------------- pass 1: per-edge messages (once per edge tile) ----------------
    const_e = lambda j: (0, 0)
    edge_in_specs = [
        pl.BlockSpec((te, 1), lambda j: (j, 0)),               # src
        pl.BlockSpec((te, D), lambda j: (j, 0)),               # edge_attr
        pl.BlockSpec((n_pad, Cin), const_e),                   # full x (bf16), grid-constant
        pl.BlockSpec((D - 1, H), const_e),                     # we1
        pl.BlockSpec((1, H), const_e),                         # be1
        pl.BlockSpec((H, Cin), const_e),                       # w23 = we2 @ wlin
        pl.BlockSpec((1, Cin), const_e),                       # b23 = be2 @ wlin
        pl.BlockSpec((1, Cin), const_e),                       # blin
    ]
    # Rough working-set upper bound (double-buffered tiles + constants + temporaries).
    edge_ws = (2 * (te * 4 + te * D * 4 + te * Cin * 4)
               + 2 * (n_pad * Cin * 2)
               + 2 * 4 * ((D - 1) * H + H + H * Cin + 2 * Cin)
               + te * n_pad * 6 + 4 * te * (H + 2 * Cin))

    msg = pl.pallas_call(
        _edge_msg_kernel,
        out_shape=jax.ShapeDtypeStruct((e_pad, Cin), jnp.float32),
        grid=(e_tiles,),
        in_specs=edge_in_specs,
        out_specs=pl.BlockSpec((te, Cin), lambda j: (j, 0)),
        compiler_params=pltpu.CompilerParams(
            dimension_semantics=("parallel",),
            vmem_limit_bytes=_vmem_limit(edge_ws)),
    )(src, ea, x_bf16,
      params["we1"], params["be1"], w23, b23, params["blin"])

    # -------------------- pass 2: scatter-add reduction + GINE node MLP -----------------
    const_n = lambda i, j: (0, 0)
    node_in_specs = [
        pl.BlockSpec((1, te), lambda i, j: (0, j)),            # dst
        pl.BlockSpec((te, Cin), lambda i, j: (j, 0)),          # msg (f32)
        pl.BlockSpec((tn, Cin), lambda i, j: (i, 0)),          # node tile of x (f32 residual)
        pl.BlockSpec((Cin, Cout), const_n),                    # w1
        pl.BlockSpec((1, Cout), const_n),                      # b1
        pl.BlockSpec((1, Cout), const_n),                      # gamma
        pl.BlockSpec((1, Cout), const_n),                      # beta
        pl.BlockSpec((Cout, Cout), const_n),                   # w2
        pl.BlockSpec((1, Cout), const_n),                      # b2
    ]
    node_ws = (2 * (te * 4 + te * Cin * 4 + tn * Cin * 4 + tn * Cout * 4)
               + 2 * 4 * (Cin * Cout + Cout * Cout + 4 * Cout)
               + tn * te * 8 + 4 * tn * (Cin + 2 * Cout)
               + tn * Cin * 4)

    out = pl.pallas_call(
        _scatter_node_kernel,
        out_shape=jax.ShapeDtypeStruct((n_pad, Cout), jnp.float32),
        grid=(n_tiles, e_tiles),
        in_specs=node_in_specs,
        out_specs=pl.BlockSpec((tn, Cout), lambda i, j: (i, 0)),
        scratch_shapes=[pltpu.VMEM((tn, Cin), jnp.float32)],
        compiler_params=pltpu.CompilerParams(
            dimension_semantics=("parallel", "arbitrary"),
            vmem_limit_bytes=_vmem_limit(node_ws)),
    )(dst, msg, x_f32,
      params["w1"], params["b1"], params["gamma"], params["beta"],
      params["w2"], params["b2"])
    return out[:N]


def _reference(x, edge_index, edge_attr, params):
    """Plain-JAX f32 reference of the same forward pass (torch eval-mode semantics)."""
    polarity = jnp.clip(edge_attr[:, 0:1], 0.0, 1.0)
    raw = edge_attr[:, 1:]
    e1 = jnp.maximum(raw @ params["we1"] + params["be1"], 0.0)
    e2 = e1 @ params["we2"] + params["be2"]
    gated = e2 * (polarity + 0.01)
    edge_emb = gated @ params["wlin"] + params["blin"]
    src, dst = edge_index[0], edge_index[1]
    msg = jnp.maximum(x[src] + edge_emb, 0.0)
    agg = jnp.zeros_like(x).at[dst].add(msg)
    h = (1.0 + GIN_EPS) * x + agg
    h1 = h @ params["w1"] + params["b1"]
    mean = jnp.mean(h1, axis=-1, keepdims=True)
    var = jnp.mean((h1 - mean) ** 2, axis=-1, keepdims=True)
    h1n = (h1 - mean) * lax.rsqrt(var + LN_EPS) * params["gamma"] + params["beta"]
    h2 = jnp.maximum(h1n, 0.0)
    return h2 @ params["w2"] + params["b2"]


def _init_params(key, feature_dim, hidden_dim, in_channels, out_channels):
    ks = jax.random.split(key, 5)

    def lin(k, fan_in, fan_out):
        kw, kb = jax.random.split(k)
        bound = 1.0 / jnp.sqrt(fan_in)
        w = jax.random.uniform(kw, (fan_in, fan_out), jnp.float32, -bound, bound)
        b = jax.random.uniform(kb, (1, fan_out), jnp.float32, -bound, bound)
        return w, b

    we1, be1 = lin(ks[0], feature_dim, hidden_dim)     # edge_mlp.0
    we2, be2 = lin(ks[1], hidden_dim, hidden_dim)      # edge_mlp.2
    wlin, blin = lin(ks[2], hidden_dim, in_channels)   # GINEConv.lin (edge_dim -> in_channels)
    w1, b1 = lin(ks[3], in_channels, out_channels)     # gine.nn.0
    w2, b2 = lin(ks[4], out_channels, out_channels)    # gine.nn.4
    return dict(
        we1=we1, be1=be1, we2=we2, be2=be2, wlin=wlin, blin=blin,
        w1=w1, b1=b1, w2=w2, b2=b2,
        gamma=jnp.ones((1, out_channels), jnp.float32),
        beta=jnp.zeros((1, out_channels), jnp.float32),
    )


if __name__ == "__main__":
    key = jax.random.PRNGKey(0)
    k_x, k_ei, k_ea, k_p = jax.random.split(key, 4)

    # Small synthetic graph; hidden_dim = 128 as in the module spec, lane-dense channels.
    N, E = 256, 512
    in_channels, out_channels = 128, 128
    hidden_dim = 128
    edge_attr_dim = 9
    feature_dim = edge_attr_dim - 1

    x = jax.random.normal(k_x, (N, in_channels), jnp.float32)
    edge_index = jax.random.randint(k_ei, (2, E), 0, N, jnp.int32)
    edge_attr = jax.random.normal(k_ea, (E, edge_attr_dim), jnp.float32)

    params = _init_params(k_p, feature_dim, hidden_dim, in_channels, out_channels)

    out = polarity_aware_conv(x, edge_index, edge_attr, params, tn=128, te=256)
    out = jax.block_until_ready(out)

    ref = _reference(x, edge_index, edge_attr, params)
    assert out.shape == (N, out_channels)
    # Remaining drift comes only from the bf16 gather operand (x) and the f32 w23/b23
    # pre-fusion; measured error is well inside this tolerance (scatter path is now f32).
    max_err = float(jnp.max(jnp.abs(out - ref)))
    assert jnp.allclose(out, ref, rtol=2e-2, atol=2e-2), f"mismatch vs reference: {max_err}"

    print("KERNEL_OK")
</pallas_src>

<mosaic_0001>
module attributes {stable_mosaic.version = 11 : i64} {
  func.func @_edge_msg_kernel(%arg0: i32, %arg1: memref<256x1xi32, #tpu.memory_space<vmem>>, %arg2: memref<256x9xf32, #tpu.memory_space<vmem>>, %arg3: memref<256x128xbf16, #tpu.memory_space<vmem>>, %arg4: memref<8x128xf32, #tpu.memory_space<vmem>>, %arg5: memref<1x128xf32, #tpu.memory_space<vmem>>, %arg6: memref<128x128xf32, #tpu.memory_space<vmem>>, %arg7: memref<1x128xf32, #tpu.memory_space<vmem>>, %arg8: memref<1x128xf32, #tpu.memory_space<vmem>>, %arg9: memref<256x128xf32, #tpu.memory_space<vmem>>) attributes {dimension_semantics = [#tpu.dimension_semantics<parallel>], iteration_bounds = array<i64: 2>, scalar_prefetch = 0 : i64, scratch_operands = 0 : i64, tpu.core_type = #tpu.core_type<tc>, window_params = [{transform_indices = @transform_0, window_bounds = array<i64: 256, 1>}, {transform_indices = @transform_1, window_bounds = array<i64: 256, 9>}, {pipeline_mode = #tpu.pipeline_mode<synchronous>, transform_indices = @transform_2, window_bounds = array<i64: 256, 128>}, {pipeline_mode = #tpu.pipeline_mode<synchronous>, transform_indices = @transform_3, window_bounds = array<i64: 8, 128>}, {pipeline_mode = #tpu.pipeline_mode<synchronous>, transform_indices = @transform_4, window_bounds = array<i64: 1, 128>}, {pipeline_mode = #tpu.pipeline_mode<synchronous>, transform_indices = @transform_5, window_bounds = array<i64: 128, 128>}, {pipeline_mode = #tpu.pipeline_mode<synchronous>, transform_indices = @transform_6, window_bounds = array<i64: 1, 128>}, {pipeline_mode = #tpu.pipeline_mode<synchronous>, transform_indices = @transform_7, window_bounds = array<i64: 1, 128>}, {transform_indices = @transform_8, window_bounds = array<i64: 256, 128>}]} {
    %c0 = arith.constant 0 : index
    %c0_0 = arith.constant 0 : index
    %0 = vector.load %arg2[%c0, %c0_0] : memref<256x9xf32, #tpu.memory_space<vmem>>, vector<256x9xf32>
    %1 = vector.extract_strided_slice %0 {offsets = [0, 0], sizes = [256, 1], strides = [1, 1]} : vector<256x9xf32> to vector<256x1xf32>
    %cst = arith.constant 0.000000e+00 : f32
    %cst_1 = arith.constant 1.000000e+00 : f32
    %2 = vector.broadcast %cst : f32 to vector<256x1xf32>
    %3 = arith.maximumf %2, %1 : vector<256x1xf32>
    %4 = vector.broadcast %cst_1 : f32 to vector<256x1xf32>
    %5 = arith.minimumf %4, %3 : vector<256x1xf32>
    %6 = vector.extract_strided_slice %0 {offsets = [0, 1], sizes = [256, 8], strides = [1, 1]} : vector<256x9xf32> to vector<256x8xf32>
    %c0_2 = arith.constant 0 : index
    %c0_3 = arith.constant 0 : index
    %7 = vector.load %arg4[%c0_2, %c0_3] : memref<8x128xf32, #tpu.memory_space<vmem>>, vector<8x128xf32>
    %cst_4 = arith.constant dense<0.000000e+00> : vector<256x128xf32>
    %8 = tpu.matmul %6, %7, %cst_4 {dimension_numbers = #tpu.dot_dimension_numbers<[1], [0], [0], [1], [0, 0, 1, 1], [], []>} : vector<256x8xf32>, vector<8x128xf32>, vector<256x128xf32> -> vector<256x128xf32>
    %c0_5 = arith.constant 0 : index
    %c0_6 = arith.constant 0 : index
    %9 = vector.load %arg5[%c0_5, %c0_6] : memref<1x128xf32, #tpu.memory_space<vmem>>, vector<1x128xf32>
    %10 = vector.broadcast %9 : vector<1x128xf32> to vector<256x128xf32>
    %11 = arith.addf %8, %10 : vector<256x128xf32>
    %cst_7 = arith.constant 0.000000e+00 : f32
    %12 = vector.broadcast %cst_7 : f32 to vector<256x128xf32>
    %13 = arith.maximumf %11, %12 : vector<256x128xf32>
    %cst_8 = arith.constant 0.00999999977 : f32
    %14 = vector.broadcast %cst_8 : f32 to vector<256x1xf32>
    %15 = arith.addf %5, %14 : vector<256x1xf32>
    %c0_9 = arith.constant 0 : index
    %c0_10 = arith.constant 0 : index
    %16 = vector.load %arg6[%c0_9, %c0_10] : memref<128x128xf32, #tpu.memory_space<vmem>>, vector<128x128xf32>
    %cst_11 = arith.constant dense<0.000000e+00> : vector<256x128xf32>
    %17 = tpu.matmul %13, %16, %cst_11 {dimension_numbers = #tpu.dot_dimension_numbers<[1], [0], [0], [1], [0, 0, 1, 1], [], []>} : vector<256x128xf32>, vector<128x128xf32>, vector<256x128xf32> -> vector<256x128xf32>
    %c0_12 = arith.constant 0 : index
    %c0_13 = arith.constant 0 : index
    %18 = vector.load %arg7[%c0_12, %c0_13] : memref<1x128xf32, #tpu.memory_space<vmem>>, vector<1x128xf32>
    %19 = vector.broadcast %18 : vector<1x128xf32> to vector<256x128xf32>
    %20 = arith.addf %17, %19 : vector<256x128xf32>
    %21 = vector.broadcast %15 : vector<256x1xf32> to vector<256x128xf32>
    %22 = arith.mulf %21, %20 : vector<256x128xf32>
    %c0_14 = arith.constant 0 : index
    %c0_15 = arith.constant 0 : index
    %23 = vector.load %arg8[%c0_14, %c0_15] : memref<1x128xf32, #tpu.memory_space<vmem>>, vector<1x128xf32>
    %24 = vector.broadcast %23 : vector<1x128xf32> to vector<256x128xf32>
    %25 = arith.addf %22, %24 : vector<256x128xf32>
    %26 = tpu.iota {dimensions = array<i32: 1>} : vector<256x256xi32>
    %c0_16 = arith.constant 0 : index
    %c0_17 = arith.constant 0 : index
    %27 = vector.load %arg1[%c0_16, %c0_17] : memref<256x1xi32, #tpu.memory_space<vmem>>, vector<256x1xi32>
    %28 = vector.broadcast %27 : vector<256x1xi32> to vector<256x256xi32>
    %29 = arith.cmpi eq, %26, %28 : vector<256x256xi32>
    %30 = arith.extui %29 : vector<256x256xi1> to vector<256x256xi32>
    %31 = arith.sitofp %30 : vector<256x256xi32> to vector<256x256xf32>
    %32 = arith.truncf %31 : vector<256x256xf32> to vector<256x256xbf16>
    %c0_18 = arith.constant 0 : index
    %c0_19 = arith.constant 0 : index
    %33 = vector.load %arg3[%c0_18, %c0_19] : memref<256x128xbf16, #tpu.memory_space<vmem>>, vector<256x128xbf16>
    %cst_20 = arith.constant dense<0.000000e+00> : vector<256x128xf32>
    %34 = tpu.matmul %32, %33, %cst_20 {dimension_numbers = #tpu.dot_dimension_numbers<[1], [0], [0], [1], [0, 0, 1, 1], [], []>} : vector<256x256xbf16>, vector<256x128xbf16>, vector<256x128xf32> -> vector<256x128xf32>
    %35 = arith.addf %34, %25 : vector<256x128xf32>
    %cst_21 = arith.constant 0.000000e+00 : f32
    %36 = vector.broadcast %cst_21 : f32 to vector<256x128xf32>
    %37 = arith.maximumf %35, %36 : vector<256x128xf32>
    %c0_22 = arith.constant 0 : index
    %c0_23 = arith.constant 0 : index
    %38 = vector.load %arg9[%c0_22, %c0_23] : memref<256x128xf32, #tpu.memory_space<vmem>>, vector<256x128xf32>
    tpu.vector_store %arg9[%c0_22, %c0_23], %37 {strides = array<i32>} : memref<256x128xf32, #tpu.memory_space<vmem>>, vector<256x128xf32>,
    return
  }
  func.func @transform_0(%arg0: i32) -> (i32, i32) {
    %c0_i32 = arith.constant 0 : i32
    %c0_i32_0 = arith.constant 0 : i32
    return %arg0, %c0_i32 : i32, i32
  }
  func.func @transform_1(%arg0: i32) -> (i32, i32) {
    %c0_i32 = arith.constant 0 : i32
    %c0_i32_0 = arith.constant 0 : i32
    return %arg0, %c0_i32 : i32, i32
  }
  func.func @transform_2(%arg0: i32) -> (i32, i32) {
    %c0_i32 = arith.constant 0 : i32
    %c0_i32_0 = arith.constant 0 : i32
    %c0_i32_1 = arith.constant 0 : i32
    return %c0_i32, %c0_i32_0 : i32, i32
  }
  func.func @transform_3(%arg0: i32) -> (i32, i32) {
    %c0_i32 = arith.constant 0 : i32
    %c0_i32_0 = arith.constant 0 : i32
    %c0_i32_1 = arith.constant 0 : i32
    return %c0_i32, %c0_i32_0 : i32, i32
  }
  func.func @transform_4(%arg0: i32) -> (i32, i32) {
    %c0_i32 = arith.constant 0 : i32
    %c0_i32_0 = arith.constant 0 : i32
    %c0_i32_1 = arith.constant 0 : i32
    return %c0_i32, %c0_i32_0 : i32, i32
  }
  func.func @transform_5(%arg0: i32) -> (i32, i32) {
    %c0_i32 = arith.constant 0 : i32
    %c0_i32_0 = arith.constant 0 : i32
    %c0_i32_1 = arith.constant 0 : i32
    return %c0_i32, %c0_i32_0 : i32, i32
  }
  func.func @transform_6(%arg0: i32) -> (i32, i32) {
    %c0_i32 = arith.constant 0 : i32
    %c0_i32_0 = arith.constant 0 : i32
    %c0_i32_1 = arith.constant 0 : i32
    return %c0_i32, %c0_i32_0 : i32, i32
  }
  func.func @transform_7(%arg0: i32) -> (i32, i32) {
    %c0_i32 = arith.constant 0 : i32
    %c0_i32_0 = arith.constant 0 : i32
    %c0_i32_1 = arith.constant 0 : i32
    return %c0_i32, %c0_i32_0 : i32, i32
  }
  func.func @transform_8(%arg0: i32) -> (i32, i32) {
    %c0_i32 = arith.constant 0 : i32
    %c0_i32_0 = arith.constant 0 : i32
    return %arg0, %c0_i32 : i32, i32
  }
}

</mosaic_0001>

<bundles_post_ra>
// kernel: tpu_custom_call.1
= control target key start
LH: loop header
LB: loop body
LE: loop exit
PB: predicated region body
PF: predicated region fallthrough
CT: control target
= control target key end

     0   :  { %13 = vsyncpa [#allocation3], 0  ;;  %s3855_s0 = inlined_call_operand.vmem [shape: s32[512,1], index: 0, kind: input, shape index: {}]   ;;  %s3856_s1 = inlined_call_operand.vmem [shape: f32[512,9], index: 1, kind: input, shape index: {}]   ;;  %s3857_s2 = inlined_call_operand.vmem [shape: bf16[256,128], index: 2, kind: input, shape index: {}]   ;;  %s3858_s3 = inlined_call_operand.vmem [shape: f32[8,128], index: 3, kind: input, shape index: {}]   ;;  %s3859_s4 = inlined_call_operand.vmem [shape: f32[1,128], index: 4, kind: input, shape index: {}]   ;;  %s3860_s5 = inlined_call_operand.vmem [shape: f32[128,128], index: 5, kind: input, shape index: {}]   ;;  %s3861_s6 = inlined_call_operand.vmem [shape: f32[1,128], index: 6, kind: input, shape index: {}]   ;;  %s3862_s7 = inlined_call_operand.vmem [shape: f32[1,128], index: 7, kind: input, shape index: {}]   ;;  %s3863_s8 = inlined_call_operand.hbm [shape: f32[512,128], index: 8, kind: output, shape index: {}]  }
   0x1   :  { %15 = vsyncpa [#allocation3 + $0x1], 0  ;;  %s2901_s27 = smov 0   ;;  %s2903_s28 = smov 0  }
   0x2   :  { %s2905_s29 = smov 0   ;;  %s2907_s30 = smov 0  }
   0x3 LB: > { %s2922_s9 = sadd.s32 4294967295, %s2848_s30   ;;  %s2159_s10 = sadd.s32 4294967294, %s2848_s30   ;;  %s2848_s30 = sphi %s2907_s30, %s3895_s30   ;;  %s2844_s29 = sphi %s2905_s29, %s3894_s29   ;;  %s2840_s28 = sphi %s2903_s28, %s3893_s28   ;;  %s2836_s27 = sphi %s2901_s27, %s3892_s27  }
   0x4   : > { %s2926_s11 = sadd.s32 1, %s2848_s30   ;;  %s206_s12 = sadd.s32 1, %s2844_s29 }
   0x5   : > { %s203_s13 = ssub.s32 %s2848_s30, %s2926_s11  ;;  %p216_p0 = scmp.ne.s32.totalorder %s2844_s29, %s2840_s28 }
   0x6   : > { %p204_p1 = scmp.eq.s32.totalorder %s203_s13, 0  ;;  %p217_p2 = scmp.eq.s32.totalorder %s2922_s9, 1 }
   0x7   : > { %p222_p3 = scmp.ne.s32.totalorder %s2840_s28, %s2836_s27  ;;  %p223_p4 = scmp.eq.s32.totalorder %s2159_s10, 1 }
   0x8   : > { %s2937_s14 = scalar_select %p204_p1, %s2844_s29, %s206_s12  }
   0x9   : > { %p2939_p5 = por %p217_p2, %p216_p0  ;;  %p2943_p6 = por %p223_p4, %p222_p3 }
   0xa   : > { %p2162_p7 = scmp.ge.s32.totalorder %s2848_s30, 1  ;;  %p277_p8 = scmp.lt.s32.totalorder %s2848_s30, 3 }
   0xc   : > { %p278_p9 = pnand %p2162_p7, %p277_p8 }
   0xd   : > { %s2164_s17 = sshll.u32 (!%p278_p9), %s2922_s9, 5  ;;  %v426_v0 = vld [vmem:[%s3858_s3] sm:$0xff] (!%p278_p9)  ;;  %v2850_v1 = vmov (!%p278_p9), 0   ;;  %s2851_s24 = smov (!%p278_p9), 127   ;;  %vm530_vm0 = vcmask (!%p278_p9), 64512  }
   0xe   : > { %281 = sbr.rel (%p278_p9) target bundleno = 702 (0x2be), region = 52  ;;  %p317_p10 = scmp.lt.s32.totalorder (!%p278_p9), %s2164_s17, 63  ;;  %2769 = vset.pattern.permute.xlu1 (!%p278_p9), %v2850_v1  ;;  %2768 = vset.pattern.permute.xlu0 (!%p278_p9), %v2850_v1  ;;  %v3145_v46 = vld [vmem:[%s3857_s2 + $0x40] sm:$0xff] (!%p278_p9)  }
   0xf   : > { %2546 = vmatprep.subr.mxu0 (!%p278_p9), %v426_v0  ;;  %s313_s18 = sand.u32 (!%p278_p9), 1, %s2840_s28   ;;  %s2853_s13 = smov (!%p278_p9), [#allocation2]  }
  0x10   : > { %2547 = vmatpush3.msra.mxu0 (!%p278_p9), %v426_v0  ;;  %s2163_s21 = sshll.u32 (!%p278_p9), %s313_s18, 8  ;;  %s3814_s12 = scalar_lea.sflag (!%p278_p9), [#allocation3], %s313_s18 }
  0x11   : > { %2434 = vmatprep.subr.bf16.mxu0 (!%p278_p9), %v3145_v46  ;;  %s3661_s22 = scalar_lea.vmem (!%p278_p9), [#allocation2], %s2163_s21 }
  0x15   : > { %s3897_s17 = smov (!%p317_p10, %s2164_s17), 63 }
  0x16   : > { %s2165_s20 = sshll.u32 %s3897_s17, 3  ;;  %s2790_s17 = sshll.u32 %s2853_s13, 4  ;;  %s2791_s17 = int_to_ptr.vmem [resolvable:$false] %s2790_s17 }
  0x17   : > { %s2961_s23 = scalar_lea.vmem %s3856_s1, %s2165_s20  ;;  %s3124_s10 = scalar_lea.vmem %s3855_s0, %s2165_s20 }
  0x18   : > { %v2964_v2 = vld [vmem:[%s2961_s23] sm:$0xff]  ;;  %v2967_v3 = vld [vmem:[%s2961_s23 + $0x10] sm:$0xff]  ;;  %v2974_v4 = vld [vmem:[%s2961_s23 + $0x8] sm:$0xff]  ;;  %s2792_s19 = scalar_lea.vmem %s2791_s17, 8192 }
  0x19   : > { %466 = vrot.lane.b32.xlu0 %v2964_v2, %s2851_s24  ;;  %470 = vrot.lane.b32.xlu1 %v2967_v3, %s2851_s24  ;;  %v2977_v5 = vld [vmem:[%s2961_s23 + $0x18] sm:$0xff]  ;;  %v2984_v6 = vld [vmem:[%s2961_s23 + $0x20] sm:$0xff]  ;;  %v362_v1 = vmax.f32 %v2964_v2, 0.0 }
  0x1a   : > { %v2987_v7 = vld [vmem:[%s2961_s23 + $0x28] sm:$0xff]  ;;  %v2994_v8 = vld [vmem:[%s2961_s23 + $0x30] sm:$0xff]  ;;  %v2997_v9 = vld [vmem:[%s2961_s23 + $0x38] sm:$0xff] }
  0x1b   : > { %v3004_v10 = vld [vmem:[%s2961_s23 + $0x40] sm:$0xff]  ;;  %v3007_v11 = vld [vmem:[%s2961_s23 + $0x48] sm:$0xff]  ;;  %v3014_v12 = vld [vmem:[%s2961_s23 + $0x50] sm:$0xff]  ;;  %v394_v2 = vmin.f32 %v362_v1, 1.0 }
  0x1c   : > { %v3017_v13 = vld [vmem:[%s2961_s23 + $0x58] sm:$0xff]  ;;  %v3024_v14 = vld [vmem:[%s2961_s23 + $0x60] sm:$0xff]  ;;  %v3027_v15 = vld [vmem:[%s2961_s23 + $0x68] sm:$0xff] }
  0x1d   : > { %468 = vrot.lane.b32.xlu0 %v2974_v4, %s2851_s24  ;;  %472 = vrot.lane.b32.xlu1 %v2977_v5, %s2851_s24  ;;  %v3034_v16 = vld [vmem:[%s2961_s23 + $0x70] sm:$0xff]  ;;  %v3037_v17 = vld [vmem:[%s2961_s23 + $0x78] sm:$0xff] }
  0x1e   : > { %v3044_v18 = vld [vmem:[%s2961_s23 + $0x80] sm:$0xff]  ;;  %v3047_v19 = vld [vmem:[%s2961_s23 + $0x88] sm:$0xff]  ;;  %v3054_v20 = vld [vmem:[%s2961_s23 + $0x90] sm:$0xff] }
  0x1f   : > { %v3057_v21 = vld [vmem:[%s2961_s23 + $0x98] sm:$0xff]  ;;  %v3064_v22 = vld [vmem:[%s2961_s23 + $0xa0] sm:$0xff]  ;;  %v3067_v23 = vld [vmem:[%s2961_s23 + $0xa8] sm:$0xff] }
  0x20   : > { %v3074_v24 = vld [vmem:[%s2961_s23 + $0xb0] sm:$0xff]  ;;  %v3077_v25 = vld [vmem:[%s2961_s23 + $0xb8] sm:$0xff]  ;;  %v3084_v26 = vld [vmem:[%s2961_s23 + $0xc0] sm:$0xff] }
  0x21   : > { %474 = vrot.lane.b32.xlu0 %v2984_v6, %s2851_s24  ;;  %476 = vrot.lane.b32.xlu1 %v2987_v7, %s2851_s24  ;;  %v3087_v27 = vld [vmem:[%s2961_s23 + $0xc8] sm:$0xff]  ;;  %v3094_v28 = vld [vmem:[%s2961_s23 + $0xd0] sm:$0xff] }
  0x22   : > { %v3097_v29 = vld [vmem:[%s2961_s23 + $0xd8] sm:$0xff]  ;;  %v3104_v30 = vld [vmem:[%s2961_s23 + $0xe0] sm:$0xff]  ;;  %v3107_v31 = vld [vmem:[%s2961_s23 + $0xe8] sm:$0xff] }
  0x23   : > { %v3114_v32 = vld [vmem:[%s2961_s23 + $0xf0] sm:$0xff]  ;;  %v3117_v33 = vld [vmem:[%s2961_s23 + $0xf8] sm:$0xff]  ;;  %v1367_v34 = vld [vmem:[%s3124_s10 + $0x8] sm:$0xff]  ;;  %s2352_s23 = sshll.u32 %s2922_s9, 12 }
  0x24   : > { %v1366_v35 = vld [vmem:[%s3124_s10] sm:$0xff]  ;;  %v1368_v36 = vld [vmem:[%s3124_s10 + $0x10] sm:$0xff]  ;;  %v1369_v37 = vld [vmem:[%s3124_s10 + $0x18] sm:$0xff] }
  0x25   : > { %478 = vrot.lane.b32.xlu0 %v2994_v8, %s2851_s24  ;;  %480 = vrot.lane.b32.xlu1 %v2997_v9, %s2851_s24  ;;  %v1370_v38 = vld [vmem:[%s3124_s10 + $0x20] sm:$0xff]  ;;  %v1371_v39 = vld [vmem:[%s3124_s10 + $0x28] sm:$0xff] }
  0x26   : > { %v1372_v40 = vld [vmem:[%s3124_s10 + $0x30] sm:$0xff]  ;;  %v1373_v41 = vld [vmem:[%s3124_s10 + $0x38] sm:$0xff]  ;;  %v1374_v42 = vld [vmem:[%s3124_s10 + $0x40] sm:$0xff] }
  0x27   : > { %v1375_v43 = vld [vmem:[%s3124_s10 + $0x48] sm:$0xff]  ;;  %v1386_v44 = vld [vmem:[%s3124_s10 + $0xa0] sm:$0xff]  ;;  %v1376_v47 = vld [vmem:[%s3124_s10 + $0x50] sm:$0xff] }
  0x28   : > { %v1387_v45 = vld [vmem:[%s3124_s10 + $0xa8] sm:$0xff]  ;;  %v1377_v48 = vld [vmem:[%s3124_s10 + $0x58] sm:$0xff]  ;;  %v1388_v49 = vld [vmem:[%s3124_s10 + $0xb0] sm:$0xff] }
  0x29   : > { %482 = vrot.lane.b32.xlu0 %v3004_v10, %s2851_s24  ;;  %484 = vrot.lane.b32.xlu1 %v3007_v11, %s2851_s24  ;;  %v1389_v50 = vld [vmem:[%s3124_s10 + $0xb8] sm:$0xff]  ;;  %v1378_v51 = vld [vmem:[%s3124_s10 + $0x60] sm:$0xff] }
  0x2a   : > { %v1379_v52 = vld [vmem:[%s3124_s10 + $0x68] sm:$0xff]  ;;  %v1390_v53 = vld [vmem:[%s3124_s10 + $0xc0] sm:$0xff]  ;;  %v1380_v55 = vld [vmem:[%s3124_s10 + $0x70] sm:$0xff] }
  0x2b   : > { %v1391_v54 = vld [vmem:[%s3124_s10 + $0xc8] sm:$0xff]  ;;  %v1381_v56 = vld [vmem:[%s3124_s10 + $0x78] sm:$0xff]  ;;  %v1392_v57 = vld [vmem:[%s3124_s10 + $0xd0] sm:$0xff] }
  0x2c   : > { %v1393_v58 = vld [vmem:[%s3124_s10 + $0xd8] sm:$0xff]  ;;  %v1382_v59 = vld [vmem:[%s3124_s10 + $0x80] sm:$0xff]  ;;  %v1383_v60 = vld [vmem:[%s3124_s10 + $0x88] sm:$0xff] }
  0x2d   : > { %486 = vrot.lane.b32.xlu0 %v3014_v12, %s2851_s24  ;;  %488 = vrot.lane.b32.xlu1 %v3017_v13, %s2851_s24  ;;  %v1394_v61 = vld [vmem:[%s3124_s10 + $0xe0] sm:$0xff]  ;;  %v1395_v62 = vld [vmem:[%s3124_s10 + $0xe8] sm:$0xff] }
  0x31   : > { %490 = vrot.lane.b32.xlu0 %v3024_v14, %s2851_s24  ;;  %492 = vrot.lane.b32.xlu1 %v3027_v15, %s2851_s24 }
  0x35   : > { %494 = vrot.lane.b32.xlu0 %v3034_v16, %s2851_s24  ;;  %496 = vrot.lane.b32.xlu1 %v3037_v17, %s2851_s24 }
  0x39   : > { %498 = vrot.lane.b32.xlu0 %v3044_v18, %s2851_s24  ;;  %500 = vrot.lane.b32.xlu1 %v3047_v19, %s2851_s24 }
  0x3d   : > { %502 = vrot.lane.b32.xlu0 %v3054_v20, %s2851_s24  ;;  %504 = vrot.lane.b32.xlu1 %v3057_v21, %s2851_s24 }
  0x41   : > { %506 = vrot.lane.b32.xlu0 %v3064_v22, %s2851_s24  ;;  %508 = vrot.lane.b32.xlu1 %v3067_v23, %s2851_s24 }
  0x45   : > { %510 = vrot.lane.b32.xlu0 %v3074_v24, %s2851_s24  ;;  %512 = vrot.lane.b32.xlu1 %v3077_v25, %s2851_s24 }
  0x49   : > { %514 = vrot.lane.b32.xlu0 %v3084_v26, %s2851_s24  ;;  %516 = vrot.lane.b32.xlu1 %v3087_v27, %s2851_s24 }
  0x4d   : > { %518 = vrot.lane.b32.xlu0 %v3094_v28, %s2851_s24  ;;  %520 = vrot.lane.b32.xlu1 %v3097_v29, %s2851_s24 }
  0x51   : > { %522 = vrot.lane.b32.xlu0 %v3104_v30, %s2851_s24  ;;  %524 = vrot.lane.b32.xlu1 %v3107_v31, %s2851_s24 }
  0x55   : > { %526 = vrot.lane.b32.xlu0 %v3114_v32, %s2851_s24  ;;  %528 = vrot.lane.b32.xlu1 %v3117_v33, %s2851_s24  ;;  %s2085_s24 = sshll.u32 %s3661_s22, 4  ;;  %s3808_s24 = int_to_ptr.vmem [resolvable:$true] %s2085_s24 }
  0x56   : > { %s2786_s9 = scalar_lea.vmem %s3808_s24, 4096  ;;  %p2793_p0 = scmp.lt.s32.totalorder %s3808_s24, %s2791_s17 }
  0x57   : > { %p2787_p11 = scmp.ne.s32.totalorder %s3808_s24, %s2786_s9  ;;  %p2794_p1 = scmp.lt.s32.totalorder %s2792_s19, %s2786_s9 }
  0x59   : > { %1402 = vperm.xlu1 %2769, %v1367_v34   ;;  %1399 = vperm.xlu0 %2768, %v1366_v35   ;;  %v363_v34 = vmax.f32 %v2974_v4, 0.0  ;;  %v1384_v35 = vld [vmem:[%s3124_s10 + $0x90] sm:$0xff]  ;;  %v364_v4 = vmax.f32 %v2967_v3, 0.0  ;;  %p2788_p12 = pnand %p2787_p11, %p2939_p5  ;;  %p2795_p2 = por %p2794_p1, %p2793_p0 }
  0x5a   : > { %v3195_v3 = vld [vmem:[%s3857_s2 + $0x50] sm:$0xff]  }
  0x5b   : > { %p2789_p13 = pneg %p2788_p12 }
  0x5d   : > { %1405 = vperm.xlu1 %2769, %v1368_v36   ;;  %1408 = vperm.xlu0 %2768, %v1369_v37   ;;  %v3171_v36 = vld [vmem:[%s3857_s2] sm:$0xff]   ;;  %p2796_p3 = pnand %p2795_p2, %p2789_p13 }
  0x61   : > { %1411 = vperm.xlu1 %2769, %v1370_v38   ;;  %1414 = vperm.xlu0 %2768, %v1371_v39   ;;  %v1385_v39 = vld [vmem:[%s3124_s10 + $0x98] sm:$0xff] }
  0x65   : > { %1417 = vperm.xlu1 %2769, %v1372_v40   ;;  %1420 = vperm.xlu0 %2768, %v1373_v41   ;;  %v3177_v40 = vld [vmem:[%s3857_s2 + $0x48] sm:$0xff]   ;;  %v395_v41 = vmin.f32 %v363_v34, 1.0  ;;  %v369_v34 = vmax.f32 %v2997_v9, 0.0 }
  0x69   : > { %1423 = vperm.xlu1 %2769, %v1374_v42   ;;  %1426 = vperm.xlu0 %2768, %v1375_v43   ;;  %v365_v42 = vmax.f32 %v2977_v5, 0.0  ;;  %v1396_v43 = vld [vmem:[%s3124_s10 + $0xf0] sm:$0xff]  ;;  %v852_v5 = vadd.f32 0.01, %v394_v2 }
  0x6d   : > { %1459 = vperm.xlu1 %2769, %v1386_v44   ;;  %1462 = vperm.xlu0 %2768, %v1387_v45   ;;  %v3188_v44 = vld [vmem:[%s3857_s2 + $0x8] sm:$0xff]  }
  0x71   : > { %1429 = vperm.xlu1 %2769, %v1376_v47   ;;  %1432 = vperm.xlu0 %2768, %v1377_v48   ;;  %v1397_v48 = vld [vmem:[%s3124_s10 + $0xf8] sm:$0xff]  ;;  %s3806_s10 = scalar_lea.hbm %s3863_s8, %s2352_s23 }
  0x75   : > { %1465 = vperm.xlu1 %2769, %v1388_v49   ;;  %1468 = vperm.xlu0 %2768, %v1389_v50   ;;  %v396_v49 = vmin.f32 %v364_v4, 1.0  ;;  %v366_v50 = vmax.f32 %v2984_v6, 0.0  ;;  %v3211_v6 = vld [vmem:[%s3857_s2 + $0x58] sm:$0xff]   ;;  %v370_v4 = vmax.f32 %v3004_v10, 0.0  ;;  %v3255_v10 = vld [vmem:[%s3857_s2 + $0x20] sm:$0xff]  }
  0x79   : > { %1435 = vperm.xlu1 %2769, %v1378_v51   ;;  %1438 = vperm.xlu0 %2768, %v1379_v52   ;;  %v853_v51 = vadd.f32 0.01, %v395_v41  ;;  %v397_v52 = vmin.f32 %v365_v42, 1.0  ;;  %v888_v41 = vld [vmem:[%s3860_s5 + $0x20] sm:$0xff]  ;;  %v889_v42 = vld [vmem:[%s3860_s5 + $0x28] sm:$0xff] }
  0x7d   : > { %1471 = vperm.xlu1 %2769, %v1390_v53   ;;  %1474 = vperm.xlu0 %2768, %v1391_v54   ;;  %v367_v53 = vmax.f32 %v2987_v7, 0.0  ;;  %v3205_v54 = vld [vmem:[%s3857_s2 + $0x10] sm:$0xff]   ;;  %v884_v7 = vld [vmem:[%s3860_s5] sm:$0xff] }
  0x7f   : > { %v399_v1 = vmin.f32 %v367_v53, 1.0  ;;  %v890_v53 = vld [vmem:[%s3860_s5 + $0x30] sm:$0xff] }
  0x81   : > { %1441 = vperm.xlu1 %2769, %v1380_v55   ;;  %1444 = vperm.xlu0 %2768, %v1381_v56  }
  0x85   : > { %1477 = vperm.xlu1 %2769, %v1392_v57   ;;  %1480 = vperm.xlu0 %2768, %v1393_v58   ;;  %v885_v57 = vld [vmem:[%s3860_s5 + $0x8] sm:$0xff]  ;;  %v854_v58 = vadd.f32 0.01, %v396_v49 }
  0x86   : > { %v3261_v49 = vld [vmem:[%s3857_s2 + $0x68] sm:$0xff]  }
  0x89   : > { %1447 = vperm.xlu1 %2769, %v1382_v59   ;;  %1450 = vperm.xlu0 %2768, %v1383_v60   ;;  %v398_v59 = vmin.f32 %v366_v50, 1.0  ;;  %v368_v60 = vmax.f32 %v2994_v8, 0.0  ;;  %v3233_v8 = vld [vmem:[%s3857_s2 + $0x18] sm:$0xff]   ;;  %v2684_v50 = vpack.c.bf16 %v889_v42, %v888_v41  ;;  %v376_v42 = vmax.f32 %v3034_v16, 0.0 }
  0x8a   : > { %v3321_v16 = vld [vmem:[%s3857_s2 + $0x38] sm:$0xff]  }
  0x8b   : > { %v467_v63 = vpop.permute.xlu0 %466  ;;  %v471_v0 = vpop.permute.xlu1 %470  ;;  %v856_v9 = vadd.f32 0.01, %v398_v59  ;;  %v400_v2 = vmin.f32 %v368_v60, 1.0  ;;  %v3283_v60 = vld [vmem:[%s3857_s2 + $0x70] sm:$0xff]  }
  0x8c   : > { %2548 = vmatprep.mubr.msk.f32.mxu0 %vm530_vm0, %v467_v63  ;;  %v887_v63 = vld [vmem:[%s3860_s5 + $0x18] sm:$0xff] }
  0x8d   : > { %1483 = vperm.xlu1 %2769, %v1394_v61   ;;  %1486 = vperm.xlu0 %2768, %v1395_v62   ;;  %v2676_v61 = vpack.c.bf16 %v885_v57, %v884_v7  ;;  %v886_v62 = vld [vmem:[%s3860_s5 + $0x10] sm:$0xff]  ;;  %v373_v57 = vmax.f32 %v3017_v13, 0.0 }
  0x8f   : > { %v469_v37 = vpop.permute.xlu0 %468  ;;  %v473_v38 = vpop.permute.xlu1 %472  ;;  %2677 = vmatprep.subr.bf16.mxu1 %v2676_v61 }
  0x90   : > { %2549 = vmatmul.mubr.msk.f32.vlgmr.msra.gmra.mrb[0].mxu0 %vm530_vm0, %v469_v37  ;;  %2679 = vmatpush3.bf16.msra.mxu1 %v2676_v61 }
  0x91   : > { %2551 = vmatprep.mubr.msk.f32.mxu0 %vm530_vm0, %v471_v0  ;;  %1453 = vperm.xlu1 %2769, %v1384_v35   ;;  %v855_v0 = vadd.f32 0.01, %v397_v52  ;;  %v372_v52 = vmax.f32 %v3014_v12, 0.0  ;;  %v3277_v12 = vld [vmem:[%s3857_s2 + $0x28] sm:$0xff]  }
  0x92   : > { %1456 = vperm.xlu0 %2768, %v1385_v39   ;;  %2435 = vmatpush3.bf16.msra.mxu0 %v3171_v36  ;;  %v2680_v39 = vpack.c.bf16 %v887_v63, %v886_v62  ;;  %v374_v63 = vmax.f32 %v3024_v14, 0.0  ;;  %v3299_v14 = vld [vmem:[%s3857_s2 + $0x30] sm:$0xff]  }
  0x93   : > { %v475_v45 = vpop.permute.xlu0 %474  ;;  %v477_v47 = vpop.permute.xlu1 %476  ;;  %2436 = vmatprep.subr.bf16.mxu0 %v3177_v40  ;;  %v404_v62 = vmin.f32 %v372_v52, 1.0 }
  0x94   : > { %2552 = vmatmul.mubr.msk.f32.gmra.mrb[2].mxu0 %vm530_vm0, %v473_v38  ;;  %v3239_v38 = vld [vmem:[%s3857_s2 + $0x60] sm:$0xff]   ;;  %2681 = vmatprep.subr.bf16.mxu1 %v2680_v39  ;;  %v406_v41 = vmin.f32 %v374_v63, 1.0  ;;  %v380_v63 = vmax.f32 %v3054_v20, 0.0 }
  0x95   : > { %2554 = vmatprep.mubr.msk.f32.mxu0 %vm530_vm0, %v475_v45  ;;  %1489 = vperm.xlu1 %2769, %v1396_v43   ;;  %v857_v43 = vadd.f32 0.01, %v399_v1  ;;  %v401_v45 = vmin.f32 %v369_v34, 1.0  ;;  %v893_v1 = vld [vmem:[%s3860_s5 + $0x48] sm:$0xff] }
  0x96   : > { %1492 = vperm.xlu0 %2768, %v1397_v48   ;;  %2437 = vmatpush3.bf16.msra.mxu0 %v3188_v44  ;;  %v864_v52 = vadd.f32 0.01, %v406_v41 }
  0x97   : > { %v479_v55 = vpop.permute.xlu0 %478  ;;  %v481_v56 = vpop.permute.xlu1 %480  ;;  %2438 = vmatprep.subr.bf16.mxu0 %v3195_v3  ;;  %2683 = vmatpush3.bf16.msra.mxu1 %v2680_v39 }
  0x98   : > { %2555 = vmatmul.mubr.msk.f32.gmra.mrb[4].mxu0 %vm530_vm0, %v477_v47  ;;  %v371_v47 = vmax.f32 %v3007_v11, 0.0  ;;  %v858_v11 = vadd.f32 0.01, %v400_v2  ;;  %2685 = vmatprep.subr.bf16.mxu1 %v2684_v50  ;;  %v3305_v2 = vld [vmem:[%s3857_s2 + $0x78] sm:$0xff]  }
  0x99   : > { %2557 = vmatprep.mubr.msk.f32.mxu0 %vm530_vm0, %v479_v55  ;;  %1134 = vperm.xlu1 %2769, %v852_v5   ;;  %v891_v55 = vld [vmem:[%s3860_s5 + $0x38] sm:$0xff] }
  0x9a   : > { %1139 = vperm.xlu0 %2768, %v853_v51   ;;  %2439 = vmatpush3.bf16.msra.mxu0 %v3205_v54  ;;  %v402_v51 = vmin.f32 %v370_v4, 1.0  ;;  %v403_v7 = vmin.f32 %v371_v47, 1.0  ;;  %v2688_v61 = vpack.c.bf16 %v891_v55, %v890_v53  ;;  %v408_v53 = vmin.f32 %v376_v42, 1.0  ;;  %v896_v55 = vld [vmem:[%s3860_s5 + $0x60] sm:$0xff] }
  0x9b   : > { %v483_v35 = vpop.permute.xlu0 %482  ;;  %v485_v37 = vpop.permute.xlu1 %484  ;;  %2440 = vmatprep.subr.bf16.mxu0 %v3211_v6  ;;  %2687 = vmatpush3.bf16.msra.mxu1 %v2684_v50 }
  0x9c   : > { %2558 = vmatmul.mubr.msk.f32.gmra.mrb[6].mxu0 %vm530_vm0, %v481_v56  ;;  %v859_v56 = vadd.f32 0.01, %v401_v45  ;;  %v860_v13 = vadd.f32 0.01, %v402_v51  ;;  %v861_v34 = vadd.f32 0.01, %v403_v7  ;;  %2689 = vmatprep.subr.bf16.mxu1 %v2688_v61 }
  0x9d   : > { %2560 = vmatprep.mubr.msk.f32.mxu0 %vm530_vm0, %v483_v35  ;;  %1144 = vperm.xlu1 %2769, %v854_v58   ;;  %v405_v35 = vmin.f32 %v373_v57, 1.0  ;;  %v895_v45 = vld [vmem:[%s3860_s5 + $0x58] sm:$0xff] }
  0x9e   : > { %1149 = vperm.xlu0 %2768, %v855_v0   ;;  %2441 = vmatpush3.bf16.msra.mxu0 %v3233_v8  ;;  %v892_v0 = vld [vmem:[%s3860_s5 + $0x40] sm:$0xff] }
  0x9f   : > { %v487_v48 = vpop.permute.xlu0 %486  ;;  %v489_v5 = vpop.permute.xlu1 %488  ;;  %2442 = vmatprep.subr.bf16.mxu0 %v3239_v38  ;;  %v2692_v4 = vpack.c.bf16 %v893_v1, %v892_v0  ;;  %2691 = vmatpush3.bf16.msra.mxu1 %v2688_v61  ;;  %v863_v47 = vadd.f32 0.01, %v405_v35 }
  0xa0   : > { %2561 = vmatmul.mubr.msk.f32.gmra.mrb[8].mxu0 %vm530_vm0, %v485_v37  ;;  %v375_v37 = vmax.f32 %v3027_v15, 0.0  ;;  %v862_v15 = vadd.f32 0.01, %v404_v62 }
  0xa1   : > { %2563 = vmatprep.mubr.msk.f32.mxu0 %vm530_vm0, %v487_v48  ;;  %1154 = vperm.xlu1 %2769, %v856_v9  }
  0xa2   : > { %1159 = vperm.xlu0 %2768, %v857_v43   ;;  %2443 = vmatpush3.bf16.msra.mxu0 %v3255_v10  ;;  %v894_v43 = vld [vmem:[%s3860_s5 + $0x50] sm:$0xff]  ;;  %v407_v48 = vmin.f32 %v375_v37, 1.0 }
  0xa3   : > { %v491_v58 = vpop.permute.xlu0 %490  ;;  %v493_v59 = vpop.permute.xlu1 %492  ;;  %2444 = vmatprep.subr.bf16.mxu0 %v3261_v49  ;;  %2693 = vmatprep.subr.bf16.mxu1 %v2692_v4  ;;  %v2696_v51 = vpack.c.bf16 %v895_v45, %v894_v43  ;;  %v384_v45 = vmax.f32 %v3074_v24, 0.0 }
  0xa4   : > { %2564 = vmatmul.mubr.msk.f32.gmra.mrb[10].mxu0 %vm530_vm0, %v489_v5  ;;  %v377_v5 = vmax.f32 %v3037_v17, 0.0  ;;  %2695 = vmatpush3.bf16.msra.mxu1 %v2692_v4  ;;  %v378_v17 = vmax.f32 %v3044_v18, 0.0  ;;  %v865_v7 = vadd.f32 0.01, %v407_v48  ;;  %v385_v48 = vmax.f32 %v3077_v25, 0.0 }
  0xa5   : > { %2566 = vmatprep.mubr.msk.f32.mxu0 %vm530_vm0, %v491_v58  ;;  %1164 = vperm.xlu1 %2769, %v858_v11   ;;  %v379_v58 = vmax.f32 %v3047_v19, 0.0  ;;  %v381_v19 = vmax.f32 %v3057_v21, 0.0 }
  0xa6   : > { %1169 = vperm.xlu0 %2768, %v859_v56   ;;  %2445 = vmatpush3.bf16.msra.mxu0 %v3277_v12  ;;  %v897_v56 = vld [vmem:[%s3860_s5 + $0x68] sm:$0xff]  ;;  %v409_v57 = vmin.f32 %v377_v5, 1.0  ;;  %v410_v62 = vmin.f32 %v378_v17, 1.0 }
  0xa7   : > { %v495_v39 = vpop.permute.xlu0 %494  ;;  %v497_v9 = vpop.permute.xlu1 %496  ;;  %2446 = vmatprep.subr.bf16.mxu0 %v3283_v60  ;;  %2697 = vmatprep.subr.bf16.mxu1 %v2696_v51  ;;  %v411_v1 = vmin.f32 %v379_v58, 1.0  ;;  %v413_v4 = vmin.f32 %v381_v19, 1.0  ;;  %v389_v58 = vmax.f32 %v3097_v29, 0.0  ;;  %v392_v19 = vmax.f32 %v3114_v32, 0.0 }
  0xa8   : > { %2567 = vmatmul.mubr.msk.f32.gmra.mrb[12].mxu0 %vm530_vm0, %v493_v59  ;;  %v2700_v59 = vpack.c.bf16 %v897_v56, %v896_v55  ;;  %2699 = vmatpush3.bf16.msra.mxu1 %v2696_v51  ;;  %v867_v0 = vadd.f32 0.01, %v409_v57  ;;  %v868_v37 = vadd.f32 0.01, %v410_v62  ;;  %v386_v51 = vmax.f32 %v3084_v26, 0.0 }
  0xa9   : > { %2569 = vmatprep.mubr.msk.f32.mxu0 %vm530_vm0, %v495_v39  ;;  %1174 = vperm.xlu1 %2769, %v860_v13   ;;  %v866_v13 = vadd.f32 0.01, %v408_v53  ;;  %v412_v39 = vmin.f32 %v380_v63, 1.0  ;;  %v869_v20 = vadd.f32 0.01, %v411_v1  ;;  %v387_v53 = vmax.f32 %v3087_v27, 0.0 }
  0xaa   : > { %1179 = vperm.xlu0 %2768, %v861_v34   ;;  %2447 = vmatpush3.bf16.msra.mxu0 %v3299_v14  ;;  %v418_v56 = vmin.f32 %v386_v51, 1.0  ;;  %v421_v62 = vmin.f32 %v389_v58, 1.0  ;;  %v391_v63 = vmax.f32 %v3107_v31, 0.0  ;;  %v3872_v58 = vmov 0 }
  0xab   : > { %v499_v50 = vpop.permute.xlu0 %498  ;;  %v501_v11 = vpop.permute.xlu1 %500  ;;  %2448 = vmatprep.subr.bf16.mxu0 %v3305_v2  ;;  %2701 = vmatprep.subr.bf16.mxu1 %v2700_v59  ;;  %v870_v42 = vadd.f32 0.01, %v412_v39  ;;  %v419_v57 = vmin.f32 %v387_v53, 1.0  ;;  %v424_v39 = vmin.f32 %v392_v19, 1.0  ;;  %v3880_v19 = vmov 0 }
  0xac   : > { %2570 = vmatmul.mubr.msk.f32.gmra.mrb[14].mxu0 %vm530_vm0, %v497_v9  ;;  %2703 = vmatpush3.bf16.msra.mxu1 %v2700_v59  ;;  %v382_v9 = vmax.f32 %v3064_v22, 0.0  ;;  %v871_v22 = vadd.f32 0.01, %v413_v4  ;;  %v876_v27 = vadd.f32 0.01, %v418_v56 }
  0xad   : > { %2572 = vmatprep.mubr.msk.f32.mxu0 %vm530_vm0, %v499_v50  ;;  %1184 = vperm.xlu1 %2769, %v862_v15   ;;  %v383_v15 = vmax.f32 %v3067_v23, 0.0 }
  0xae   : > { %1189 = vperm.xlu0 %2768, %v863_v47   ;;  %2449 = vmatpush3.bf16.msra.mxu0 %v3321_v16  ;;  %v414_v43 = vmin.f32 %v382_v9, 1.0  ;;  %v1363_v9 = vlaneseq }
  0xaf   : > { %v503_v18 = vpop.permute.xlu0 %502  ;;  %v505_v61 = vpop.permute.xlu1 %504  ;;  %v415_v47 = vmin.f32 %v383_v15, 1.0  ;;  %v882_v15 = vadd.f32 0.01, %v424_v39 }
  0xb0   : > { %2573 = vmatmul.mubr.msk.f32.gmra.mrb[16].mxu0 %vm530_vm0, %v501_v11  ;;  %v872_v23 = vadd.f32 0.01, %v414_v43  ;;  %v416_v11 = vmin.f32 %v384_v45, 1.0  ;;  %v3364_v32 = vand.u32 127, %v1363_v9  ;;  %v2852_v43 = vmov 1.0|1.0  }
  0xb1   : > { %2575 = vmatprep.mubr.msk.f32.mxu0 %vm530_vm0, %v503_v18  ;;  %1194 = vperm.xlu1 %2769, %v864_v52   ;;  %v873_v24 = vadd.f32 0.01, %v415_v47  ;;  %v417_v52 = vmin.f32 %v385_v48, 1.0 }
  0xb2   : > { %1199 = vperm.xlu0 %2768, %v865_v7   ;;  %v874_v25 = vadd.f32 0.01, %v416_v11  ;;  %v388_v7 = vmax.f32 %v3094_v28, 0.0  ;;  %v877_v28 = vadd.f32 0.01, %v419_v57  ;;  %v899_v11 = vld [vmem:[%s3860_s5 + $0x78] sm:$0xff] }
  0xb3   : > { %v507_v34 = vpop.permute.xlu0 %506  ;;  %v509_v35 = vpop.permute.xlu1 %508  ;;  %v875_v26 = vadd.f32 0.01, %v417_v52 }
  0xb4   : > { %2576 = vmatmul.mubr.msk.f32.gmra.mrb[18].mxu0 %vm530_vm0, %v505_v61  ;;  %v420_v61 = vmin.f32 %v388_v7, 1.0 }
  0xb5   : > { %2578 = vmatprep.mubr.msk.f32.mxu0 %vm530_vm0, %v507_v34  ;;  %1204 = vperm.xlu1 %2769, %v866_v13   ;;  %v390_v13 = vmax.f32 %v3104_v30, 0.0  ;;  %v879_v30 = vadd.f32 0.01, %v421_v62 }
  0xb6   : > { %1209 = vperm.xlu0 %2768, %v867_v0   ;;  %v878_v29 = vadd.f32 0.01, %v420_v61 }
  0xb7   : > { %v511_v21 = vpop.permute.xlu0 %510  ;;  %v513_v41 = vpop.permute.xlu1 %512  ;;  %v422_v1 = vmin.f32 %v390_v13, 1.0  ;;  %v3874_v13 = vmov 0 }
  0xb8   : > { %2579 = vmatmul.mubr.msk.f32.gmra.mrb[20].mxu0 %vm530_vm0, %v509_v35  ;;  %v423_v35 = vmin.f32 %v391_v63, 1.0 }
  0xb9   : > { %2581 = vmatprep.mubr.msk.f32.mxu0 %vm530_vm0, %v511_v21  ;;  %1214 = vperm.xlu1 %2769, %v868_v37   ;;  %v393_v37 = vmax.f32 %v3117_v33, 0.0  ;;  %v880_v31 = vadd.f32 0.01, %v422_v1  ;;  %v3878_v1 = vmov 0 }
  0xba   : > { %1219 = vperm.xlu0 %2768, %v869_v20   ;;  %v881_v20 = vadd.f32 0.01, %v423_v35 }
  0xbb   : > { %v515_v5 = vpop.permute.xlu0 %514  ;;  %v517_v50 = vpop.permute.xlu1 %516  ;;  %v425_v4 = vmin.f32 %v393_v37, 1.0 }
  0xbc   : > { %2582 = vmatmul.mubr.msk.f32.gmra.mrb[22].mxu0 %vm530_vm0, %v513_v41  ;;  %v3367_v41 = vadd.s32 128, %v3364_v32 }
  0xbd   : > { %2584 = vmatprep.mubr.msk.f32.mxu0 %vm530_vm0, %v515_v5  ;;  %1224 = vperm.xlu1 %2769, %v870_v42   ;;  %v883_v21 = vadd.f32 0.01, %v425_v4  ;;  %v898_v5 = vld [vmem:[%s3860_s5 + $0x70] sm:$0xff]  ;;  %v3499_v4 = vld [vmem:[%s3859_s4] ss:$0 sm:$0xff] }
  0xbe   : > { %1229 = vperm.xlu0 %2768, %v871_v22   ;;  %v2704_v51 = vpack.c.bf16 %v899_v11, %v898_v5 }
  0xbf   : > { %v519_v17 = vpop.permute.xlu0 %518  ;;  %v521_v55 = vpop.permute.xlu1 %520 }
  0xc0   : > { %2585 = vmatmul.mubr.msk.f32.gmra.mrb[24].mxu0 %vm530_vm0, %v517_v50  ;;  %2705 = vmatprep.subr.bf16.mxu1 %v2704_v51 }
  0xc1   : > { %2587 = vmatprep.mubr.msk.f32.mxu0 %vm530_vm0, %v519_v17  ;;  %1234 = vperm.xlu1 %2769, %v872_v23  }
  0xc2   : > { %1239 = vperm.xlu0 %2768, %v873_v24   ;;  %2707 = vmatpush3.bf16.msra.mxu1 %v2704_v51 }
  0xc3   : > { %v523_v59 = vpop.permute.xlu0 %522  ;;  %v525_v18 = vpop.permute.xlu1 %524  ;;  %2708 = vmatprep.subr.bf16.mxu1 %v3145_v46 }
  0xc4   : > { %2588 = vmatmul.mubr.msk.f32.gmra.mrb[26].mxu0 %vm530_vm0, %v521_v55 }
  0xc5   : > { %2590 = vmatprep.mubr.msk.f32.mxu0 %vm530_vm0, %v523_v59  ;;  %1244 = vperm.xlu1 %2769, %v874_v25  }
  0xc6   : > { %1249 = vperm.xlu0 %2768, %v875_v26  }
  0xc7   : > { %v527_v0 = vpop.permute.xlu0 %526  ;;  %v529_v34 = vpop.permute.xlu1 %528 }
  0xc8   : > { %2591 = vmatmul.mubr.msk.f32.gmra.mrb[28].mxu0 %vm530_vm0, %v525_v18 }
  0xc9   : > { %2593 = vmatprep.mubr.msk.f32.mxu0 %vm530_vm0, %v527_v0  ;;  %1254 = vperm.xlu1 %2769, %v876_v27  }
  0xca   : > { %1259 = vperm.xlu0 %2768, %v877_v28   ;;  %v3876_v28 = vmov 0 }
  0xcc   : > { %2594 = vmatmul.mubr.msk.f32.gmra.mrb[30].mxu0 %vm530_vm0, %v529_v34 }
  0xcd   : > { %1264 = vperm.xlu1 %2769, %v878_v29  }
  0xce   : > { %1269 = vperm.xlu0 %2768, %v879_v30  }
  0xd1   : > { %1274 = vperm.xlu1 %2769, %v880_v31   ;;  %v3882_v31 = vmov 0 }
  0xd2   : > { %1279 = vperm.xlu0 %2768, %v881_v20  }
  0xd5   : > { %1284 = vperm.xlu1 %2769, %v882_v15  }
  0xd6   : > { %1289 = vperm.xlu0 %2768, %v883_v21  }
  0xd8   : > { %v1403_v33 = vpop.permute.xlu1 %1402  ;;  %v1400_v42 = vpop.permute.xlu0 %1399 }
  0xd9   : > { %vm1496_vm1 = vcmp.eq.s32.totalorder %v3364_v32, %v1403_v33  ;;  %vm1497_vm2 = vcmp.eq.s32.totalorder %v3367_v41, %v1403_v33  ;;  %vm1494_vm3 = vcmp.eq.s32.totalorder %v3364_v32, %v1400_v42  ;;  %vm1495_vm4 = vcmp.eq.s32.totalorder %v3367_v41, %v1400_v42 }
  0xda   : > { %vm2283_vm5 = vmpackc.low %vm1497_vm2, %vm1495_vm4 }
  0xdb   : > { %vm2285_vm6 = vmpackc.low %vm1496_vm1, %vm1494_vm3  ;;  %2284 = vmatprep.mubr.msk.bf16.mxu0 %vm2283_vm5, %v2852_v43 }
  0xdc   : > { %v1406_v45 = vpop.permute.xlu1 %1405  ;;  %v1409_v22 = vpop.permute.xlu0 %1408  ;;  %2286 = vmatmul.mubr.msk.bf16.vlgmr.msra.gmra.mrb[32].mxu0 %vm2285_vm6, %v2852_v43 }
  0xdd   : > { %vm1499_vm7 = vcmp.eq.s32.totalorder %v3367_v41, %v1406_v45  ;;  %vm1501_vm8 = vcmp.eq.s32.totalorder %v3367_v41, %v1409_v22  ;;  %vm1498_vm9 = vcmp.eq.s32.totalorder %v3364_v32, %v1406_v45  ;;  %vm1500_vm10 = vcmp.eq.s32.totalorder %v3364_v32, %v1409_v22 }
  0xde   : > { %vm2287_vm11 = vmpackc.low %vm1501_vm8, %vm1499_vm7 }
  0xdf   : > { %2288 = vmatprep.mubr.msk.bf16.mxu0 %vm2287_vm11, %v2852_v43  ;;  %vm2289_vm12 = vmpackc.low %vm1500_vm10, %vm1498_vm9 }
  0xe0   : > { %v1412_v47 = vpop.permute.xlu1 %1411  ;;  %v1415_v48 = vpop.permute.xlu0 %1414 }
  0xe1   : > { %vm1503_vm13 = vcmp.eq.s32.totalorder %v3367_v41, %v1412_v47  ;;  %vm1505_vm14 = vcmp.eq.s32.totalorder %v3367_v41, %v1415_v48  ;;  %vm1502_vm0 = vcmp.eq.s32.totalorder %v3364_v32, %v1412_v47  ;;  %vm1504_vm1 = vcmp.eq.s32.totalorder %v3364_v32, %v1415_v48 }
  0xe2   : > { %vm2291_vm15 = vmpackc.low %vm1505_vm14, %vm1503_vm13 }
  0xe3   : > { %vm2293_vm4 = vmpackc.low %vm1504_vm1, %vm1502_vm0 }
  0xe4   : > { %v1418_v50 = vpop.permute.xlu1 %1417  ;;  %v1421_v23 = vpop.permute.xlu0 %1420  ;;  %2290 = vmatmul.mubr.msk.bf16.gmra.mrb[36].mxu0 %vm2289_vm12, %v2852_v43 }
  0xe5   : > { %2292 = vmatprep.mubr.msk.bf16.mxu0 %vm2291_vm15, %v2852_v43  ;;  %vm1507_vm2 = vcmp.eq.s32.totalorder %v3367_v41, %v1418_v50  ;;  %vm1509_vm3 = vcmp.eq.s32.totalorder %v3367_v41, %v1421_v23  ;;  %vm1506_vm10 = vcmp.eq.s32.totalorder %v3364_v32, %v1418_v50  ;;  %vm1508_vm11 = vcmp.eq.s32.totalorder %v3364_v32, %v1421_v23 }
  0xe6   : > { %vm2295_vm5 = vmpackc.low %vm1509_vm3, %vm1507_vm2 }
  0xe7   : > { %vm2297_vm0 = vmpackc.low %vm1508_vm11, %vm1506_vm10 }
  0xe8   : > { %v1424_v24 = vpop.permute.xlu1 %1423  ;;  %v1427_v52 = vpop.permute.xlu0 %1426 }
  0xe9   : > { %vm1511_vm13 = vcmp.eq.s32.totalorder %v3367_v41, %v1424_v24  ;;  %vm1513_vm14 = vcmp.eq.s32.totalorder %v3367_v41, %v1427_v52 }
  0xea   : > { %vm2299_vm1 = vmpackc.low %vm1513_vm14, %vm1511_vm13 }
  0xec   : > { %v1460_v53 = vpop.permute.xlu1 %1459  ;;  %v1463_v17 = vpop.permute.xlu0 %1462  ;;  %2294 = vmatmul.mubr.msk.bf16.gmra.mrb[40].mxu0 %vm2293_vm4, %v2852_v43 }
  0xed   : > { %vm1534_vm6 = vcmp.eq.s32.totalorder %v3364_v32, %v1460_v53  ;;  %vm1535_vm7 = vcmp.eq.s32.totalorder %v3367_v41, %v1460_v53  ;;  %vm1536_vm8 = vcmp.eq.s32.totalorder %v3364_v32, %v1463_v17  ;;  %vm1537_vm9 = vcmp.eq.s32.totalorder %v3367_v41, %v1463_v17  ;;  %2296 = vmatprep.mubr.msk.bf16.mxu0 %vm2295_vm5, %v2852_v43 }
  0xee   : > { %vm3403_vm12 = vmpackc.low %vm1537_vm9, %vm1535_vm7  ;;  %vm1512_vm7 = vcmp.eq.s32.totalorder %v3364_v32, %v1427_v52 }
  0xef   : > { %vm3409_vm15 = vmpackc.low %vm1536_vm8, %vm1534_vm6  ;;  %vm1510_vm6 = vcmp.eq.s32.totalorder %v3364_v32, %v1424_v24 }
  0xf0   : > { %v1430_v25 = vpop.permute.xlu1 %1429  ;;  %v1433_v56 = vpop.permute.xlu0 %1432  ;;  %vm2301_vm13 = vmpackc.low %vm1512_vm7, %vm1510_vm6 }
  0xf1   : > { %vm1515_vm9 = vcmp.eq.s32.totalorder %v3367_v41, %v1430_v25  ;;  %vm1517_vm10 = vcmp.eq.s32.totalorder %v3367_v41, %v1433_v56 }
  0xf2   : > { %vm2303_vm14 = vmpackc.low %vm1517_vm10, %vm1515_vm9 }
  0xf4   : > { %v1466_v7 = vpop.permute.xlu1 %1465  ;;  %v1469_v26 = vpop.permute.xlu0 %1468  ;;  %2298 = vmatmul.mubr.msk.bf16.gmra.mrb[44].mxu0 %vm2297_vm0, %v2852_v43 }
  0xf5   : > { %vm1538_vm2 = vcmp.eq.s32.totalorder %v3364_v32, %v1466_v7  ;;  %vm1539_vm3 = vcmp.eq.s32.totalorder %v3367_v41, %v1466_v7  ;;  %vm1540_vm4 = vcmp.eq.s32.totalorder %v3364_v32, %v1469_v26  ;;  %vm1541_vm5 = vcmp.eq.s32.totalorder %v3367_v41, %v1469_v26  ;;  %2300 = vmatprep.mubr.msk.bf16.mxu0 %vm2299_vm1, %v2852_v43 }
  0xf6   : > { %vm3421_vm8 = vmpackc.low %vm1541_vm5, %vm1539_vm3 }
  0xf7   : > { %vm3427_vm11 = vmpackc.low %vm1540_vm4, %vm1538_vm2  ;;  %vm1514_vm2 = vcmp.eq.s32.totalorder %v3364_v32, %v1430_v25  ;;  %vm1516_vm4 = vcmp.eq.s32.totalorder %v3364_v32, %v1433_v56 }
  0xf8   : > { %v3873_v58 = vsel %vm3427_vm11, 4294967295, %v3872_v58  ;;  %v1436_v59 = vpop.permute.xlu1 %1435  ;;  %v1439_v18 = vpop.permute.xlu0 %1438 }
  0xf9   : > { %vm1519_vm7 = vcmp.eq.s32.totalorder %v3367_v41, %v1436_v59  ;;  %vm1521_vm9 = vcmp.eq.s32.totalorder %v3367_v41, %v1439_v18 }
  0xfc   : > { %v1472_v27 = vpop.permute.xlu1 %1471  ;;  %v1475_v61 = vpop.permute.xlu0 %1474  ;;  %2302 = vmatmul.mubr.msk.bf16.gmra.mrb[48].mxu0 %vm2301_vm13, %v2852_v43  ;;  %vm2305_vm13 = vmpackc.low %vm1516_vm4, %vm1514_vm2 }
  0xfd   : > { %vm1542_vm0 = vcmp.eq.s32.totalorder %v3364_v32, %v1472_v27  ;;  %vm1543_vm1 = vcmp.eq.s32.totalorder %v3367_v41, %v1472_v27  ;;  %vm1544_vm3 = vcmp.eq.s32.totalorder %v3364_v32, %v1475_v61  ;;  %vm1545_vm5 = vcmp.eq.s32.totalorder %v3367_v41, %v1475_v61  ;;  %2304 = vmatprep.mubr.msk.bf16.mxu0 %vm2303_vm14, %v2852_v43  ;;  %vm2307_vm14 = vmpackc.low %vm1521_vm9, %vm1519_vm7 }
  0xfe   : > { %vm3439_vm6 = vmpackc.low %vm1545_vm5, %vm1543_vm1 }
  0xff   : > { %v3875_v13 = vsel %vm3439_vm6, 4294967295, %v3874_v13  ;;  %vm3445_vm10 = vmpackc.low %vm1544_vm3, %vm1542_vm0  ;;  %vm1518_vm0 = vcmp.eq.s32.totalorder %v3364_v32, %v1436_v59  ;;  %vm1520_vm3 = vcmp.eq.s32.totalorder %v3364_v32, %v1439_v18 }
 0x100   : > { %v3877_v28 = vsel %vm3445_vm10, 4294967295, %v3876_v28  ;;  %v1442_v62 = vpop.permute.xlu1 %1441  ;;  %v1445_v63 = vpop.permute.xlu0 %1444 }
 0x101   : > { %vm1523_vm4 = vcmp.eq.s32.totalorder %v3367_v41, %v1442_v62  ;;  %vm1525_vm7 = vcmp.eq.s32.totalorder %v3367_v41, %v1445_v63 }
 0x104   : > { %v1478_v0 = vpop.permute.xlu1 %1477  ;;  %v1481_v29 = vpop.permute.xlu0 %1480  ;;  %2306 = vmatmul.mubr.msk.bf16.gmra.mrb[52].mxu0 %vm2305_vm13, %v2852_v43  ;;  %vm2309_vm13 = vmpackc.low %vm1520_vm3, %vm1518_vm0 }
 0x105   : > { %vm1546_vm1 = vcmp.eq.s32.totalorder %v3364_v32, %v1478_v0  ;;  %vm1547_vm5 = vcmp.eq.s32.totalorder %v3367_v41, %v1478_v0  ;;  %vm1548_vm6 = vcmp.eq.s32.totalorder %v3364_v32, %v1481_v29  ;;  %vm1549_vm11 = vcmp.eq.s32.totalorder %v3367_v41, %v1481_v29  ;;  %2308 = vmatprep.mubr.msk.bf16.mxu0 %vm2307_vm14, %v2852_v43  ;;  %vm2311_vm14 = vmpackc.low %vm1525_vm7, %vm1523_vm4 }
 0x106   : > { %vm3457_vm2 = vmpackc.low %vm1549_vm11, %vm1547_vm5 }
 0x107   : > { %v3879_v1 = vsel %vm3457_vm2, 4294967295, %v3878_v1  ;;  %vm3463_vm9 = vmpackc.low %vm1548_vm6, %vm1546_vm1  ;;  %vm1522_vm6 = vcmp.eq.s32.totalorder %v3364_v32, %v1442_v62  ;;  %vm1524_vm1 = vcmp.eq.s32.totalorder %v3364_v32, %v1445_v63 }
 0x108   : > { %v3881_v19 = vsel %vm3463_vm9, 4294967295, %v3880_v19  ;;  %v1448_v34 = vpop.permute.xlu1 %1447  ;;  %v1451_v30 = vpop.permute.xlu0 %1450 }
 0x109   : > { %vm1527_vm3 = vcmp.eq.s32.totalorder %v3367_v41, %v1448_v34  ;;  %vm1529_vm4 = vcmp.eq.s32.totalorder %v3367_v41, %v1451_v30 }
 0x10a   : > { %vm2315_vm9 = vmpackc.low %vm1529_vm4, %vm1527_vm3  ;;  %vm3890_vm3 = vnez %v3881_v19 }
 0x10c   : > { %v1484_v35 = vpop.permute.xlu1 %1483  ;;  %v1487_v37 = vpop.permute.xlu0 %1486  ;;  %2310 = vmatmul.mubr.msk.bf16.gmra.mrb[56].mxu0 %vm2309_vm13, %v2852_v43  ;;  %vm2313_vm13 = vmpackc.low %vm1524_vm1, %vm1522_vm6 }
 0x10d   : > { %vm1550_vm11 = vcmp.eq.s32.totalorder %v3364_v32, %v1484_v35  ;;  %vm1551_vm5 = vcmp.eq.s32.totalorder %v3367_v41, %v1484_v35  ;;  %vm1552_vm2 = vcmp.eq.s32.totalorder %v3364_v32, %v1487_v37  ;;  %vm1553_vm10 = vcmp.eq.s32.totalorder %v3367_v41, %v1487_v37  ;;  %2312 = vmatprep.mubr.msk.bf16.mxu0 %vm2311_vm14, %v2852_v43 }
 0x10e   : > { %vm3475_vm0 = vmpackc.low %vm1553_vm10, %vm1551_vm5  ;;  %vm1526_vm14 = vcmp.eq.s32.totalorder %v3364_v32, %v1448_v34  ;;  %vm1528_vm10 = vcmp.eq.s32.totalorder %v3364_v32, %v1451_v30 }
 0x10f   : > { %v3883_v31 = vsel %vm3475_vm0, 4294967295, %v3882_v31  ;;  %vm3481_vm7 = vmpackc.low %vm1552_vm2, %vm1550_vm11 }
 0x110   : > { %v1454_v9 = vpop.permute.xlu1 %1453  ;;  %vm2317_vm2 = vmpackc.low %vm1528_vm10, %vm1526_vm14  ;;  %vm3891_vm4 = vnez %v3883_v31 }
 0x111   : > { %v1457_v20 = vpop.permute.xlu0 %1456  ;;  %vm1531_vm5 = vcmp.eq.s32.totalorder %v3367_v41, %v1454_v9  ;;  %vm1530_vm6 = vcmp.eq.s32.totalorder %v3364_v32, %v1454_v9 }
 0x112   : > { %vm1533_vm0 = vcmp.eq.s32.totalorder %v3367_v41, %v1457_v20 }
 0x113   : > { %vm2319_vm11 = vmpackc.low %vm1533_vm0, %vm1531_vm5  ;;  %vm3886_vm0 = vnez %v3873_v58 }
 0x114   : > { %2314 = vmatmul.mubr.msk.bf16.gmra.mrb[60].mxu0 %vm2313_vm13, %v2852_v43 }
 0x115   : > { %2316 = vmatprep.mubr.msk.bf16.mxu0 %vm2315_vm9, %v2852_v43  ;;  %vm1532_vm9 = vcmp.eq.s32.totalorder %v3364_v32, %v1457_v20 }
 0x116   : > { %vm2321_vm1 = vmpackc.low %vm1532_vm9, %vm1530_vm6 }
 0x11c   : > { %2318 = vmatmul.mubr.msk.bf16.gmra.mrb[64].mxu0 %vm2317_vm2, %v2852_v43 }
 0x11d   : > { %2320 = vmatprep.mubr.msk.bf16.mxu0 %vm2319_vm11, %v2852_v43 }
 0x124   : > { %2322 = vmatmul.mubr.msk.bf16.gmra.mrb[68].mxu0 %vm2321_vm1, %v2852_v43 }
 0x163   : > { %v2550_v15 = vpop.f32.mrb[0].mxu0 }
 0x164   : > { %v667_v21 = vadd.f32 %v2550_v15, %v3499_v4  ;;  %v661_v33 = vpop.f32.mrb[1].mxu0 }
 0x165   : > { %v662_v42 = vadd.f32 %v3499_v4, %v661_v33 }
 0x166   : > { %v821_v47 = vmax.f32 %v667_v21, 0.0 }
 0x167   : > { %v2553_v45 = vpop.f32.mrb[2].mxu0  ;;  %v820_v22 = vmax.f32 %v662_v42, 0.0 }
 0x168   : > { %v677_v48 = vadd.f32 %v2553_v45, %v3499_v4  ;;  %v671_v5 = vpop.f32.mrb[3].mxu0 }
 0x169   : > { %v672_v50 = vadd.f32 %v3499_v4, %v671_v5  ;;  %2628 = vmatprep.mubr.f32.mxu1 %v820_v22 }
 0x16a   : > { %2629 = vmatmul.mubr.f32.vlgmr.msra.gmra.mrb[0].mxu1 %v821_v47  ;;  %v823_v51 = vmax.f32 %v677_v48, 0.0 }
 0x16b   : > { %v822_v23 = vmax.f32 %v672_v50, 0.0  ;;  %2716 = vmatpush3.bf16.msra.mxu1 %v3171_v36  ;;  %v2556_v11 = vpop.f32.mrb[4].mxu0 }
 0x16c   : > { %v687_v24 = vadd.f32 %v2556_v11, %v3499_v4  ;;  %v681_v52 = vpop.f32.mrb[5].mxu0  ;;  %2709 = vmatprep.subr.bf16.mxu1 %v3177_v40 }
 0x16d   : > { %v682_v53 = vadd.f32 %v3499_v4, %v681_v52  ;;  %2631 = vmatprep.mubr.f32.mxu1 %v822_v23 }
 0x16e   : > { %2632 = vmatmul.mubr.f32.gmra.mrb[2].mxu1 %v823_v51  ;;  %v825_v56 = vmax.f32 %v687_v24, 0.0 }
 0x16f   : > { %v824_v17 = vmax.f32 %v682_v53, 0.0  ;;  %v2559_v25 = vpop.f32.mrb[6].mxu0  ;;  %2717 = vmatpush3.bf16.msra.mxu1 %v3188_v44 }
 0x170   : > { %v697_v7 = vadd.f32 %v2559_v25, %v3499_v4  ;;  %v691_v26 = vpop.f32.mrb[7].mxu0  ;;  %2710 = vmatprep.subr.bf16.mxu1 %v3195_v3 }
 0x171   : > { %v692_v36 = vadd.f32 %v3499_v4, %v691_v26  ;;  %2634 = vmatprep.mubr.f32.mxu1 %v824_v17 }
 0x172   : > { %2635 = vmatmul.mubr.f32.gmra.mrb[4].mxu1 %v825_v56  ;;  %v827_v18 = vmax.f32 %v697_v7, 0.0 }
 0x173   : > { %v826_v59 = vmax.f32 %v692_v36, 0.0  ;;  %v2562_v40 = vpop.f32.mrb[8].mxu0  ;;  %2718 = vmatpush3.bf16.msra.mxu1 %v3205_v54 }
 0x174   : > { %v707_v27 = vadd.f32 %v2562_v40, %v3499_v4  ;;  %v701_v61 = vpop.f32.mrb[9].mxu0  ;;  %2711 = vmatprep.subr.bf16.mxu1 %v3211_v6 }
 0x175   : > { %v702_v44 = vadd.f32 %v3499_v4, %v701_v61  ;;  %2637 = vmatprep.mubr.f32.mxu1 %v826_v59 }
 0x176   : > { %2638 = vmatmul.mubr.f32.gmra.mrb[6].mxu1 %v827_v18  ;;  %v829_v63 = vmax.f32 %v707_v27, 0.0 }
 0x177   : > { %v828_v62 = vmax.f32 %v702_v44, 0.0  ;;  %v2565_v3 = vpop.f32.mrb[10].mxu0  ;;  %2719 = vmatpush3.bf16.msra.mxu1 %v3233_v8 }
 0x178   : > { %v717_v0 = vadd.f32 %v2565_v3, %v3499_v4  ;;  %v711_v29 = vpop.f32.mrb[11].mxu0  ;;  %2712 = vmatprep.subr.bf16.mxu1 %v3239_v38 }
 0x179   : > { %v712_v54 = vadd.f32 %v3499_v4, %v711_v29  ;;  %2640 = vmatprep.mubr.f32.mxu1 %v828_v62 }
 0x17a   : > { %2641 = vmatmul.mubr.f32.gmra.mrb[8].mxu1 %v829_v63  ;;  %v831_v30 = vmax.f32 %v717_v0, 0.0 }
 0x17b   : > { %v830_v34 = vmax.f32 %v712_v54, 0.0  ;;  %v2568_v6 = vpop.f32.mrb[12].mxu0  ;;  %2720 = vmatpush3.bf16.msra.mxu1 %v3255_v10 }
 0x17c   : > { %v727_v35 = vadd.f32 %v2568_v6, %v3499_v4  ;;  %v721_v37 = vpop.f32.mrb[13].mxu0  ;;  %2713 = vmatprep.subr.bf16.mxu1 %v3261_v49 }
 0x17d   : > { %v722_v8 = vadd.f32 %v3499_v4, %v721_v37  ;;  %2643 = vmatprep.mubr.f32.mxu1 %v830_v34 }
 0x17e   : > { %2644 = vmatmul.mubr.f32.gmra.mrb[10].mxu1 %v831_v30  ;;  %v833_v20 = vmax.f32 %v727_v35, 0.0 }
 0x17f   : > { %v832_v9 = vmax.f32 %v722_v8, 0.0  ;;  %v2571_v38 = vpop.f32.mrb[14].mxu0  ;;  %2721 = vmatpush3.bf16.msra.mxu1 %v3277_v12 }
 0x180   : > { %v737_v15 = vadd.f32 %v2571_v38, %v3499_v4  ;;  %v731_v21 = vpop.f32.mrb[15].mxu0  ;;  %2714 = vmatprep.subr.bf16.mxu1 %v3283_v60 }
 0x181   : > { %v732_v10 = vadd.f32 %v3499_v4, %v731_v21  ;;  %2646 = vmatprep.mubr.f32.mxu1 %v832_v9 }
 0x182   : > { %2647 = vmatmul.mubr.f32.gmra.mrb[12].mxu1 %v833_v20  ;;  %v835_v42 = vmax.f32 %v737_v15, 0.0 }
 0x183   : > { %v834_v33 = vmax.f32 %v732_v10, 0.0  ;;  %v2574_v49 = vpop.f32.mrb[16].mxu0  ;;  %2722 = vmatpush3.bf16.msra.mxu1 %v3299_v14 }
 0x184   : > { %v747_v45 = vadd.f32 %v2574_v49, %v3499_v4  ;;  %v741_v22 = vpop.f32.mrb[17].mxu0  ;;  %2715 = vmatprep.subr.bf16.mxu1 %v3305_v2 }
 0x185   : > { %v742_v12 = vadd.f32 %v3499_v4, %v741_v22  ;;  %2649 = vmatprep.mubr.f32.mxu1 %v834_v33 }
 0x186   : > { %2650 = vmatmul.mubr.f32.gmra.mrb[14].mxu1 %v835_v42  ;;  %v837_v48 = vmax.f32 %v747_v45, 0.0 }
 0x187   : > { %v836_v47 = vmax.f32 %v742_v12, 0.0  ;;  %v2577_v60 = vpop.f32.mrb[18].mxu0  ;;  %2723 = vmatpush3.bf16.msra.mxu1 %v3321_v16 }
 0x188   : > { %v757_v5 = vadd.f32 %v2577_v60, %v3499_v4  ;;  %v751_v50 = vpop.f32.mrb[19].mxu0 }
 0x189   : > { %v752_v14 = vadd.f32 %v3499_v4, %v751_v50  ;;  %2652 = vmatprep.mubr.f32.mxu1 %v836_v47  ;;  %v1493_v50 = vpop.permute.xlu0 %1492 }
 0x18a   : > { %2653 = vmatmul.mubr.f32.gmra.mrb[16].mxu1 %v837_v48  ;;  %v839_v51 = vmax.f32 %v757_v5, 0.0  ;;  %vm1557_vm14 = vcmp.eq.s32.totalorder %v3367_v41, %v1493_v50  ;;  %vm1556_vm2 = vcmp.eq.s32.totalorder %v3364_v32, %v1493_v50  ;;  %v3640_v50 = vld [vmem:[%s3862_s7] ss:$0 sm:$0xff] }
 0x18b   : > { %v838_v23 = vmax.f32 %v752_v14, 0.0  ;;  %v2580_v11 = vpop.f32.mrb[20].mxu0 }
 0x18c   : > { %v767_v2 = vadd.f32 %v2580_v11, %v3499_v4  ;;  %v761_v24 = vpop.f32.mrb[21].mxu0 }
 0x18d   : > { %v762_v52 = vadd.f32 %v3499_v4, %v761_v24  ;;  %2655 = vmatprep.mubr.f32.mxu1 %v838_v23 }
 0x18e   : > { %2656 = vmatmul.mubr.f32.gmra.mrb[18].mxu1 %v839_v51  ;;  %v841_v17 = vmax.f32 %v767_v2, 0.0 }
 0x18f   : > { %v840_v53 = vmax.f32 %v762_v52, 0.0  ;;  %v2583_v16 = vpop.f32.mrb[22].mxu0 }
 0x190   : > { %v777_v25 = vadd.f32 %v2583_v16, %v3499_v4  ;;  %v771_v56 = vpop.f32.mrb[23].mxu0 }
 0x191   : > { %v772_v7 = vadd.f32 %v3499_v4, %v771_v56  ;;  %2658 = vmatprep.mubr.f32.mxu1 %v840_v53 }
 0x192   : > { %2659 = vmatmul.mubr.f32.gmra.mrb[20].mxu1 %v841_v17  ;;  %v843_v59 = vmax.f32 %v777_v25, 0.0 }
 0x193   : > { %v842_v26 = vmax.f32 %v772_v7, 0.0  ;;  %v2586_v36 = vpop.f32.mrb[24].mxu0 }
 0x194   : > { %v787_v40 = vadd.f32 %v2586_v36, %v3499_v4  ;;  %v781_v18 = vpop.f32.mrb[25].mxu0 }
 0x195   : > { %v782_v27 = vadd.f32 %v3499_v4, %v781_v18  ;;  %2661 = vmatprep.mubr.f32.mxu1 %v842_v26 }
 0x196   : > { %2662 = vmatmul.mubr.f32.gmra.mrb[22].mxu1 %v843_v59  ;;  %v845_v62 = vmax.f32 %v787_v40, 0.0 }
 0x197   : > { %v844_v61 = vmax.f32 %v782_v27, 0.0  ;;  %v2589_v44 = vpop.f32.mrb[26].mxu0 }
 0x198   : > { %v797_v3 = vadd.f32 %v2589_v44, %v3499_v4  ;;  %v791_v63 = vpop.f32.mrb[27].mxu0 }
 0x199   : > { %v792_v0 = vadd.f32 %v3499_v4, %v791_v63  ;;  %2664 = vmatprep.mubr.f32.mxu1 %v844_v61 }
 0x19a   : > { %2665 = vmatmul.mubr.f32.gmra.mrb[24].mxu1 %v845_v62  ;;  %v847_v34 = vmax.f32 %v797_v3, 0.0 }
 0x19b   : > { %v846_v29 = vmax.f32 %v792_v0, 0.0  ;;  %v2592_v54 = vpop.f32.mrb[28].mxu0 }
 0x19c   : > { %v807_v6 = vadd.f32 %v2592_v54, %v3499_v4  ;;  %v801_v30 = vpop.f32.mrb[29].mxu0 }
 0x19d   : > { %v802_v35 = vadd.f32 %v3499_v4, %v801_v30  ;;  %2667 = vmatprep.mubr.f32.mxu1 %v846_v29 }
 0x19e   : > { %2668 = vmatmul.mubr.f32.gmra.mrb[26].mxu1 %v847_v34  ;;  %v849_v9 = vmax.f32 %v807_v6, 0.0 }
 0x19f   : > { %v848_v37 = vmax.f32 %v802_v35, 0.0  ;;  %v2595_v8 = vpop.f32.mrb[30].mxu0 }
 0x1a0   : > { %v817_v38 = vadd.f32 %v2595_v8, %v3499_v4  ;;  %v811_v20 = vpop.f32.mrb[31].mxu0 }
 0x1a1   : > { %v812_v15 = vadd.f32 %v3499_v4, %v811_v20  ;;  %2670 = vmatprep.mubr.f32.mxu1 %v848_v37 }
 0x1a2   : > { %2671 = vmatmul.mubr.f32.gmra.mrb[28].mxu1 %v849_v9  ;;  %v851_v10 = vmax.f32 %v817_v38, 0.0 }
 0x1a3   : > { %v850_v21 = vmax.f32 %v812_v15, 0.0 }
 0x1a5   : > { %2673 = vmatprep.mubr.f32.mxu1 %v850_v21  ;;  %v1140_v21 = vpop.permute.xlu0 %1139 }
 0x1a6   : > { %2674 = vmatmul.mubr.f32.gmra.mrb[30].mxu1 %v851_v10 }
 0x1a7   : > { %2324 = vmatprep.mubr.msk.bf16.mxu1 %vm3403_vm12, %v2852_v43  ;;  %vm3887_vm12 = vnez %v3875_v13 }
 0x1aa   : > { %2326 = vmatmul.mubr.msk.bf16.vlgmr.msra.gmra.mrb[32].mxu1 %vm3409_vm15, %v2852_v43  ;;  %vm3888_vm15 = vnez %v3877_v28  ;;  %v1490_v28 = vpop.permute.xlu1 %1489 }
 0x1ab   : > { %2328 = vmatprep.mubr.msk.bf16.mxu1 %vm3421_vm8, %v2852_v43  ;;  %vm3889_vm8 = vnez %v3879_v1  ;;  %vm1555_vm13 = vcmp.eq.s32.totalorder %v3367_v41, %v1490_v28  ;;  %vm1554_vm5 = vcmp.eq.s32.totalorder %v3364_v32, %v1490_v28 }
 0x1ac   : > { %vm2343_vm10 = vmpackc.low %vm1557_vm14, %vm1555_vm13 }
 0x1ad   : > { %vm2345_vm11 = vmpackc.low %vm1556_vm2, %vm1554_vm5 }
 0x1ae   : > { %v1135_v10 = vpop.permute.xlu1 %1134 }
 0x1af   : > { %v2450_v33 = vpop.f32.mrb[32].mxu0 }
 0x1b0   : > { %v2451_v4 = vpop.f32.mrb[33].mxu0 }
 0x1b1   : > { %v3557_v49 = vadd.f32 %v2451_v4, %v2450_v33  ;;  %v2453_v42 = vpop.f32.mrb[34].mxu0  ;;  %v1150_v33 = vpop.permute.xlu0 %1149 }
 0x1b2   : > { %2330 = vmatmul.mubr.msk.bf16.gmra.mrb[36].mxu1 %vm3886_vm0, %v2852_v43  ;;  %v2454_v45 = vpop.f32.mrb[35].mxu0  ;;  %v1145_v4 = vpop.permute.xlu1 %1144 }
 0x1b3   : > { %2332 = vmatprep.mubr.msk.bf16.mxu1 %vm3887_vm12, %v2852_v43  ;;  %v3565_v46 = vadd.f32 %v2454_v45, %v2453_v42 }
 0x1b5   : > { %v1160_v42 = vpop.permute.xlu0 %1159 }
 0x1b6   : > { %v1155_v45 = vpop.permute.xlu1 %1154 }
 0x1b7   : > { %v2456_v55 = vpop.f32.mrb[36].mxu0 }
 0x1b8   : > { %v2457_v22 = vpop.f32.mrb[37].mxu0 }
 0x1b9   : > { %v3567_v57 = vadd.f32 %v2457_v22, %v2456_v55  ;;  %v2459_v12 = vpop.f32.mrb[38].mxu0  ;;  %v1170_v55 = vpop.permute.xlu0 %1169 }
 0x1ba   : > { %2334 = vmatmul.mubr.msk.bf16.gmra.mrb[40].mxu1 %vm3888_vm15, %v2852_v43  ;;  %v2460_v47 = vpop.f32.mrb[39].mxu0  ;;  %v1165_v22 = vpop.permute.xlu1 %1164 }
 0x1bb   : > { %2336 = vmatprep.mubr.msk.bf16.mxu1 %vm3889_vm8, %v2852_v43  ;;  %v3575_v58 = vadd.f32 %v2460_v47, %v2459_v12 }
 0x1bd   : > { %v3624_v12 = vpop.permute.xlu0 %1179 }
 0x1be   : > { %v3626_v47 = vpop.permute.xlu1 %1174 }
 0x1bf   : > { %v2462_v13 = vpop.f32.mrb[40].mxu0 }
 0x1c0   : > { %v2463_v60 = vpop.f32.mrb[41].mxu0 }
 0x1c1   : > { %v2465_v48 = vpop.f32.mrb[42].mxu0  ;;  %v3585_v23 = vadd.f32 %v2463_v60, %v2462_v13  ;;  %v3631_v13 = vld [vmem:[%s3861_s6] ss:$0 sm:$0xff]  ;;  %v3634_v28 = vpop.permute.xlu0 %1189 }
 0x1c2   : > { %2338 = vmatmul.mubr.msk.bf16.gmra.mrb[44].mxu1 %vm3890_vm3, %v2852_v43  ;;  %v2466_v5 = vpop.f32.mrb[43].mxu0 }
 0x1c3   : > { %2340 = vmatprep.mubr.msk.bf16.mxu1 %vm3891_vm4, %v2852_v43  ;;  %v3587_v11 = vadd.f32 %v2466_v5, %v2465_v48 }
 0x1c7   : > { %v2468_v1 = vpop.f32.mrb[44].mxu0 }
 0x1c8   : > { %v2469_v14 = vpop.f32.mrb[45].mxu0 }
 0x1c9   : > { %v2471_v51 = vpop.f32.mrb[46].mxu0  ;;  %v3593_v31 = vadd.f32 %v2469_v14, %v2468_v1  ;;  %v3643_v14 = vpop.permute.xlu1 %1184 }
 0x1ca   : > { %2342 = vmatmul.mubr.msk.bf16.gmra.mrb[48].mxu1 %vm3481_vm7, %v2852_v43  ;;  %v2472_v19 = vpop.f32.mrb[47].mxu0 }
 0x1cb   : > { %2344 = vmatprep.mubr.msk.bf16.mxu1 %vm2343_vm10, %v2852_v43  ;;  %v3595_v2 = vadd.f32 %v2472_v19, %v2471_v51 }
 0x1cf   : > { %v2474_v41 = vpop.f32.mrb[48].mxu0 }
 0x1d0   : > { %v2475_v24 = vpop.f32.mrb[49].mxu0 }
 0x1d1   : > { %v3599_v52 = vadd.f32 %v2475_v24, %v2474_v41  ;;  %v2477_v53 = vpop.f32.mrb[50].mxu0 }
 0x1d2   : > { %2346 = vmatmul.mubr.msk.bf16.gmra.mrb[52].mxu1 %vm2345_vm11, %v2852_v43  ;;  %v2478_v39 = vpop.f32.mrb[51].mxu0 }
 0x1d3   : > { %v3602_v16 = vadd.f32 %v2478_v39, %v2477_v53 }
 0x1d7   : > { %v2480_v17 = vpop.f32.mrb[52].mxu0 }
 0x1d8   : > { %v2481_v25 = vpop.f32.mrb[53].mxu0 }
 0x1d9   : > { %v3604_v56 = vadd.f32 %v2481_v25, %v2480_v17  ;;  %v2483_v7 = vpop.f32.mrb[54].mxu0 }
 0x1da   : > { %v2484_v26 = vpop.f32.mrb[55].mxu0 }
 0x1db   : > { %v3606_v36 = vadd.f32 %v2484_v26, %v2483_v7 }
 0x1df   : > { %v2486_v32 = vpop.f32.mrb[56].mxu0 }
 0x1e0   : > { %v2487_v59 = vpop.f32.mrb[57].mxu0 }
 0x1e1   : > { %v3608_v40 = vadd.f32 %v2487_v59, %v2486_v32  ;;  %v2489_v18 = vpop.f32.mrb[58].mxu0  ;;  %v3652_v32 = vpop.permute.xlu0 %1199 }
 0x1e2   : > { %v2490_v27 = vpop.f32.mrb[59].mxu0 }
 0x1e3   : > { %v3610_v61 = vadd.f32 %v2490_v27, %v2489_v18 }
 0x1e7   : > { %v2492_v43 = vpop.f32.mrb[60].mxu0 }
 0x1e8   : > { %v2493_v44 = vpop.f32.mrb[61].mxu0 }
 0x1e9   : > { %v3612_v62 = vadd.f32 %v2493_v44, %v2492_v43  ;;  %v2495_v3 = vpop.f32.mrb[62].mxu0  ;;  %v3655_v43 = vpop.permute.xlu1 %1194 }
 0x1ea   : > { %v2496_v63 = vpop.f32.mrb[63].mxu0 }
 0x1eb   : > { %v3614_v0 = vadd.f32 %v2496_v63, %v2495_v3 }
 0x1ef   : > { %v2498_v29 = vpop.f32.mrb[64].mxu0 }
 0x1f0   : > { %v2499_v54 = vpop.f32.mrb[65].mxu0 }
 0x1f1   : > { %v3616_v34 = vadd.f32 %v2499_v54, %v2498_v29  ;;  %v2501_v6 = vpop.f32.mrb[66].mxu0 }
 0x1f2   : > { %v2502_v30 = vpop.f32.mrb[67].mxu0 }
 0x1f3   : > { %v3618_v35 = vadd.f32 %v2502_v30, %v2501_v6 }
 0x1f7   : > { %v2504_v37 = vpop.f32.mrb[68].mxu0 }
 0x1f8   : > { %v2505_v8 = vpop.f32.mrb[69].mxu0 }
 0x1f9   : > { %v3620_v9 = vadd.f32 %v2505_v8, %v2504_v37  ;;  %v2507_v38 = vpop.f32.mrb[70].mxu0 }
 0x1fa   : > { %v2508_v20 = vpop.f32.mrb[71].mxu0 }
 0x1fb   : > { %v3622_v15 = vadd.f32 %v2508_v20, %v2507_v38 }
 0x23d   : > { %v2630_v60 = vpop.f32.mrb[0].mxu1 }
 0x23e   : > { %v979_v48 = vadd.f32 %v2630_v60, %v3631_v13  ;;  %v973_v5 = vpop.f32.mrb[1].mxu1 }
 0x23f   : > { %v974_v1 = vadd.f32 %v3631_v13, %v973_v5 }
 0x240   : > { %v1293_v51 = vmul.f32 %v1140_v21, %v979_v48 }
 0x241   : > { %v1292_v19 = vmul.f32 %v1135_v10, %v974_v1  ;;  %v2633_v41 = vpop.f32.mrb[2].mxu1 }
 0x242   : > { %v1332_v24 = vadd.f32 %v3640_v50, %v1293_v51  ;;  %v989_v53 = vadd.f32 %v2633_v41, %v3631_v13  ;;  %v983_v39 = vpop.f32.mrb[3].mxu1 }
 0x243   : > { %v1331_v17 = vadd.f32 %v3640_v50, %v1292_v19  ;;  %v984_v25 = vadd.f32 %v3631_v13, %v983_v39 }
 0x244   : > { %v1884_v7 = vadd.f32 %v3565_v46, %v1332_v24  ;;  %v1295_v26 = vmul.f32 %v1150_v33, %v989_v53 }
 0x245   : > { %v1881_v59 = vadd.f32 %v3557_v49, %v1331_v17  ;;  %v1294_v18 = vmul.f32 %v1145_v4, %v984_v25  ;;  %v2636_v27 = vpop.f32.mrb[4].mxu1  ;;  %v3669_v4 = vpop.permute.xlu0 %1209 }
 0x246   : > { %v2008_v44 = vmax.f32 %v1884_v7, 0.0  ;;  %v1334_v3 = vadd.f32 %v3640_v50, %v1295_v26  ;;  %v999_v63 = vadd.f32 %v2636_v27, %v3631_v13  ;;  %v993_v29 = vpop.f32.mrb[5].mxu1 }
 0x247   : > { %v2007_v54 = vmax.f32 %v1881_v59, 0.0  ;;  %v1333_v6 = vadd.f32 %v3640_v50, %v1294_v18  ;;  %v994_v46 = vadd.f32 %v3631_v13, %v993_v29 }
 0x248   : > { %2040 = vst [vmem:[%s3661_s22 + $0x8] sm:$0xff] %v2008_v44  ;;  %v1892_v49 = vadd.f32 %v3575_v58, %v1334_v3  ;;  %v1297_v30 = vmul.f32 %v1160_v42, %v999_v63  ;;  %v3673_v42 = vpop.permute.xlu1 %1204 }
 0x249   : > { %2039 = vst [vmem:[%s3661_s22] sm:$0xff] %v2007_v54  ;;  %v1889_v37 = vadd.f32 %v3567_v57, %v1333_v6  ;;  %v1296_v8 = vmul.f32 %v1155_v45, %v994_v46  ;;  %v2639_v38 = vpop.f32.mrb[6].mxu1 }
 0x24a   : > { %v2010_v20 = vmax.f32 %v1892_v49, 0.0  ;;  %v1336_v21 = vadd.f32 %v3640_v50, %v1297_v30  ;;  %v1009_v10 = vadd.f32 %v2639_v38, %v3631_v13  ;;  %v1003_v33 = vpop.f32.mrb[7].mxu1 }
 0x24b   : > { %v2009_v60 = vmax.f32 %v1889_v37, 0.0  ;;  %v1335_v48 = vadd.f32 %v3640_v50, %v1296_v8  ;;  %v1004_v58 = vadd.f32 %v3631_v13, %v1003_v33 }
 0x24c   : > { %2042 = vst [vmem:[%s3661_s22 + $0x18] sm:$0xff] %v2010_v20  ;;  %v1900_v57 = vadd.f32 %v3587_v11, %v1336_v21  ;;  %v1299_v45 = vmul.f32 %v1170_v55, %v1009_v10  ;;  %v1215_v59 = vpop.permute.xlu1 %1214 }
 0x24d   : > { %2041 = vst [vmem:[%s3661_s22 + $0x10] sm:$0xff] %v2009_v60  ;;  %v1897_v5 = vadd.f32 %v3585_v23, %v1335_v48  ;;  %v1298_v1 = vmul.f32 %v1165_v22, %v1004_v58  ;;  %v2642_v51 = vpop.f32.mrb[8].mxu1  ;;  %v1220_v23 = vpop.permute.xlu0 %1219 }
 0x24e   : > { %v2012_v19 = vmax.f32 %v1900_v57, 0.0  ;;  %v1338_v41 = vadd.f32 %v3640_v50, %v1299_v45  ;;  %v1019_v24 = vadd.f32 %v2642_v51, %v3631_v13  ;;  %v1013_v53 = vpop.f32.mrb[9].mxu1 }
 0x24f   : > { %v2011_v39 = vmax.f32 %v1897_v5, 0.0  ;;  %v1337_v17 = vadd.f32 %v3640_v50, %v1298_v1  ;;  %v1014_v25 = vadd.f32 %v3631_v13, %v1013_v53 }
 0x250   : > { %2044 = vst [vmem:[%s3661_s22 + $0x28] sm:$0xff] %v2012_v19  ;;  %v1908_v11 = vadd.f32 %v3595_v2, %v1338_v41  ;;  %v1301_v55 = vmul.f32 %v3624_v12, %v1019_v24 }
 0x251   : > { %2043 = vst [vmem:[%s3661_s22 + $0x20] sm:$0xff] %v2011_v39  ;;  %v1905_v22 = vadd.f32 %v3593_v31, %v1337_v17  ;;  %v1300_v7 = vmul.f32 %v3626_v47, %v1014_v25  ;;  %v2645_v26 = vpop.f32.mrb[10].mxu1  ;;  %v1230_v8 = vpop.permute.xlu0 %1229 }
 0x252   : > { %v2014_v18 = vmax.f32 %v1908_v11, 0.0  ;;  %v1340_v27 = vadd.f32 %v3640_v50, %v1301_v55  ;;  %v1029_v44 = vadd.f32 %v2645_v26, %v3631_v13  ;;  %v1023_v3 = vpop.f32.mrb[11].mxu1 }
 0x253   : > { %v2013_v63 = vmax.f32 %v1905_v22, 0.0  ;;  %v1339_v2 = vadd.f32 %v3640_v50, %v1300_v7  ;;  %v1024_v12 = vadd.f32 %v3631_v13, %v1023_v3 }
 0x254   : > { %2046 = vst [vmem:[%s3661_s22 + $0x38] sm:$0xff] %v2014_v18  ;;  %v1916_v29 = vadd.f32 %v3602_v16, %v1340_v27  ;;  %v1303_v31 = vmul.f32 %v3634_v28, %v1029_v44  ;;  %v1225_v28 = vpop.permute.xlu1 %1224 }
 0x255   : > { %2045 = vst [vmem:[%s3661_s22 + $0x30] sm:$0xff] %v2013_v63  ;;  %v1913_v47 = vadd.f32 %v3599_v52, %v1339_v2  ;;  %v1302_v54 = vmul.f32 %v3643_v14, %v1024_v12  ;;  %v2648_v6 = vpop.f32.mrb[12].mxu1  ;;  %v3716_v1 = vpop.permute.xlu0 %1239 }
 0x256   : > { %v2016_v46 = vmax.f32 %v1916_v29, 0.0  ;;  %v1342_v49 = vadd.f32 %v3640_v50, %v1303_v31  ;;  %v1039_v30 = vadd.f32 %v2648_v6, %v3631_v13  ;;  %v1033_v37 = vpop.f32.mrb[13].mxu1 }
 0x257   : > { %v2015_v38 = vmax.f32 %v1913_v47, 0.0  ;;  %v1341_v20 = vadd.f32 %v3640_v50, %v1302_v54  ;;  %v1034_v16 = vadd.f32 %v3631_v13, %v1033_v37 }
 0x258   : > { %2048 = vst [vmem:[%s3661_s22 + $0x48] sm:$0xff] %v2016_v46  ;;  %v1924_v52 = vadd.f32 %v3606_v36, %v1342_v49  ;;  %v1305_v14 = vmul.f32 %v3652_v32, %v1039_v30  ;;  %v3721_v41 = vpop.permute.xlu1 %1234 }
 0x259   : > { %2047 = vst [vmem:[%s3661_s22 + $0x40] sm:$0xff] %v2015_v38  ;;  %v1921_v21 = vadd.f32 %v3604_v56, %v1341_v20  ;;  %v1304_v10 = vmul.f32 %v3655_v43, %v1034_v16  ;;  %v2651_v33 = vpop.f32.mrb[14].mxu1  ;;  %v1250_v44 = vpop.permute.xlu0 %1249 }
 0x25a   : > { %v2018_v60 = vmax.f32 %v1924_v52, 0.0  ;;  %v1344_v48 = vadd.f32 %v3640_v50, %v1305_v14  ;;  %v1049_v58 = vadd.f32 %v2651_v33, %v3631_v13  ;;  %v1043_v57 = vpop.f32.mrb[15].mxu1 }
 0x25b   : > { %v2017_v45 = vmax.f32 %v1921_v21, 0.0  ;;  %v1343_v5 = vadd.f32 %v3640_v50, %v1304_v10  ;;  %v1044_v36 = vadd.f32 %v3631_v13, %v1043_v57 }
 0x25c   : > { %2050 = vst [vmem:[%s3661_s22 + $0x58] sm:$0xff] %v2018_v60  ;;  %v1932_v32 = vadd.f32 %v3610_v61, %v1344_v48  ;;  %v1307_v56 = vmul.f32 %v3669_v4, %v1049_v58 }
 0x25d   : > { %2049 = vst [vmem:[%s3661_s22 + $0x50] sm:$0xff] %v2017_v45  ;;  %v1929_v43 = vadd.f32 %v3608_v40, %v1343_v5  ;;  %v1306_v51 = vmul.f32 %v3673_v42, %v1044_v36  ;;  %v2654_v19 = vpop.f32.mrb[16].mxu1  ;;  %v1260_v30 = vpop.permute.xlu0 %1259 }
 0x25e   : > { %v2020_v24 = vmax.f32 %v1932_v32, 0.0  ;;  %v1346_v53 = vadd.f32 %v3640_v50, %v1307_v56  ;;  %v1059_v39 = vadd.f32 %v2654_v19, %v3631_v13  ;;  %v1053_v17 = vpop.f32.mrb[17].mxu1 }
 0x25f   : > { %v2019_v61 = vmax.f32 %v1929_v43, 0.0  ;;  %v1345_v4 = vadd.f32 %v3640_v50, %v1306_v51  ;;  %v1054_v25 = vadd.f32 %v3631_v13, %v1053_v17 }
 0x260   : > { %2052 = vst [vmem:[%s3661_s22 + $0x68] sm:$0xff] %v2020_v24  ;;  %v1940_v40 = vadd.f32 %v3614_v0, %v1346_v53  ;;  %v1309_v11 = vmul.f32 %v1220_v23, %v1059_v39  ;;  %v1245_v23 = vpop.permute.xlu1 %1244 }
 0x261   : > { %2051 = vst [vmem:[%s3661_s22 + $0x60] sm:$0xff] %v2019_v61  ;;  %v1937_v42 = vadd.f32 %v3612_v62, %v1345_v4  ;;  %v1308_v55 = vmul.f32 %v1215_v59, %v1054_v25  ;;  %v2657_v22 = vpop.f32.mrb[18].mxu1 }
 0x262   : > { %v2022_v7 = vmax.f32 %v1940_v40, 0.0  ;;  %v1348_v26 = vadd.f32 %v3640_v50, %v1309_v11  ;;  %v1069_v18 = vadd.f32 %v2657_v22, %v3631_v13  ;;  %v1063_v27 = vpop.f32.mrb[19].mxu1 }
 0x263   : > { %v2021_v3 = vmax.f32 %v1937_v42, 0.0  ;;  %v1347_v63 = vadd.f32 %v3640_v50, %v1308_v55  ;;  %v1064_v0 = vadd.f32 %v3631_v13, %v1063_v27 }
 0x264   : > { %2054 = vst [vmem:[%s3661_s22 + $0x78] sm:$0xff] %v2022_v7  ;;  %v1948_v62 = vadd.f32 %v3618_v35, %v1348_v26  ;;  %v1311_v59 = vmul.f32 %v1230_v8, %v1069_v18 }
 0x265   : > { %2053 = vst [vmem:[%s3661_s22 + $0x70] sm:$0xff] %v2021_v3  ;;  %v1945_v2 = vadd.f32 %v3616_v34, %v1347_v63  ;;  %v1310_v12 = vmul.f32 %v1225_v28, %v1064_v0  ;;  %v2660_v29 = vpop.f32.mrb[20].mxu1  ;;  %v1255_v34 = vpop.permute.xlu1 %1254 }
 0x266   : > { %v2024_v31 = vmax.f32 %v1948_v62, 0.0  ;;  %v1350_v47 = vadd.f32 %v3640_v50, %v1311_v59  ;;  %v1073_v54 = vpop.f32.mrb[21].mxu1  ;;  %v1079_v22 = vadd.f32 %v2660_v29, %v3631_v13 }
 0x267   : > { %v2023_v6 = vmax.f32 %v1945_v2, 0.0  ;;  %v1349_v46 = vadd.f32 %v3640_v50, %v1310_v12  ;;  %v1074_v40 = vadd.f32 %v3631_v13, %v1073_v54 }
 0x268   : > { %2056 = vst [vmem:[%s3661_s22 + $0x88] sm:$0xff] %v2024_v31  ;;  %v1956_v49 = vadd.f32 %v3622_v15, %v1350_v47  ;;  %v1313_v2 = vmul.f32 %v3716_v1, %v1079_v22 }
 0x269   : > { %2055 = vst [vmem:[%s3661_s22 + $0x80] sm:$0xff] %v2023_v6  ;;  %v1953_v35 = vadd.f32 %v3620_v9, %v1349_v46  ;;  %v2663_v37 = vpop.f32.mrb[22].mxu1  ;;  %v1270_v9 = vpop.permute.xlu0 %1269  ;;  %v1312_v63 = vmul.f32 %v3721_v41, %v1074_v40 }
 0x26a   : > { %v2026_v8 = vmax.f32 %v1956_v49, 0.0  ;;  %v1089_v38 = vadd.f32 %v2663_v37, %v3631_v13  ;;  %v1083_v20 = vpop.f32.mrb[23].mxu1  ;;  %v1265_v58 = vpop.permute.xlu1 %1264 }
 0x26b   : > { %v2025_v16 = vmax.f32 %v1953_v35, 0.0  ;;  %v1084_v28 = vadd.f32 %v3631_v13, %v1083_v20  ;;  %v1351_v54 = vadd.f32 %v3640_v50, %v1312_v63 }
 0x26c   : > { %2058 = vst [vmem:[%s3661_s22 + $0x98] sm:$0xff] %v2026_v8  ;;  %v1315_v52 = vmul.f32 %v1250_v44, %v1089_v38 }
 0x26d   : > { %2057 = vst [vmem:[%s3661_s22 + $0x90] sm:$0xff] %v2025_v16  ;;  %v1314_v14 = vmul.f32 %v1245_v23, %v1084_v28  ;;  %v2666_v21 = vpop.f32.mrb[24].mxu1  ;;  %v1280_v24 = vpop.permute.xlu0 %1279 }
 0x26e   : > { %v1099_v15 = vadd.f32 %v2666_v21, %v3631_v13  ;;  %v1093_v10 = vpop.f32.mrb[25].mxu1  ;;  %v3751_v33 = vadd.f32 %v3640_v50, %v1315_v52  ;;  %v1275_v17 = vpop.permute.xlu1 %1274 }
 0x26f   : > { %v1094_v60 = vadd.f32 %v3631_v13, %v1093_v10  ;;  %v1353_v48 = vadd.f32 %v3640_v50, %v1314_v14 }
 0x270   : > { %v1317_v57 = vmul.f32 %v1260_v30, %v1099_v15  ;;  %v1352_v30 = vadd.f32 %v3640_v50, %v1313_v2 }
 0x271   : > { %v1316_v45 = vmul.f32 %v1255_v34, %v1094_v60  ;;  %v2669_v5 = vpop.f32.mrb[26].mxu1  ;;  %v1290_v3 = vpop.permute.xlu0 %1289 }
 0x272   : > { %v1109_v36 = vadd.f32 %v2669_v5, %v3631_v13  ;;  %v1103_v32 = vpop.f32.mrb[27].mxu1  ;;  %v3757_v56 = vadd.f32 %v3640_v50, %v1317_v57  ;;  %v1285_v62 = vpop.permute.xlu1 %1284 }
 0x273   : > { %v1104_v43 = vadd.f32 %v3631_v13, %v1103_v32  ;;  %v1355_v51 = vadd.f32 %v3640_v50, %v1316_v45 }
 0x274   : > { %v1319_v19 = vmul.f32 %v1270_v9, %v1109_v36 }
 0x275   : > { %v1318_v53 = vmul.f32 %v1265_v58, %v1104_v43  ;;  %v2672_v39 = vpop.f32.mrb[28].mxu1 }
 0x276   : > { %v1119_v61 = vadd.f32 %v2672_v39, %v3631_v13  ;;  %v1113_v4 = vpop.f32.mrb[29].mxu1  ;;  %v3763_v25 = vadd.f32 %v3640_v50, %v1319_v19 }
 0x277   : > { %v1114_v11 = vadd.f32 %v3631_v13, %v1113_v4  ;;  %v1357_v42 = vadd.f32 %v3640_v50, %v1318_v53 }
 0x278   : > { %v1321_v55 = vmul.f32 %v1280_v24, %v1119_v61 }
 0x279   : > { %v1320_v7 = vmul.f32 %v1275_v17, %v1114_v11  ;;  %v2675_v26 = vpop.f32.mrb[30].mxu1 }
 0x27a   : > { %v1129_v18 = vadd.f32 %v2675_v26, %v3631_v13  ;;  %v1123_v27 = vpop.f32.mrb[31].mxu1  ;;  %v3771_v44 = vadd.f32 %v3640_v50, %v1321_v55 }
 0x27b   : > { %v1124_v0 = vadd.f32 %v3631_v13, %v1123_v27  ;;  %v1359_v23 = vadd.f32 %v3640_v50, %v1320_v7 }
 0x27c   : > { %v1323_v59 = vmul.f32 %v1290_v3, %v1129_v18 }
 0x27d   : > { %v1322_v12 = vmul.f32 %v1285_v62, %v1124_v0  ;;  %v2510_v29 = vpop.f32.mrb[32].mxu1 }
 0x27e   : > { %v2511_v31 = vpop.f32.mrb[33].mxu1  ;;  %v3778_v47 = vadd.f32 %v3640_v50, %v1323_v59 }
 0x27f   : > { %v2512_v6 = vadd.f32 %v2511_v31, %v2510_v29  ;;  %v2513_v41 = vpop.f32.mrb[34].mxu1  ;;  %v3782_v13 = vadd.f32 %v3640_v50, %v1322_v12 }
 0x280   : > { %v2514_v46 = vpop.f32.mrb[35].mxu1 }
 0x281   : > { %v1961_v49 = vadd.f32 %v2512_v6, %v1351_v54  ;;  %v2515_v1 = vadd.f32 %v2514_v46, %v2513_v41 }
 0x283   : > { %v2027_v35 = vmax.f32 %v1961_v49, 0.0  ;;  %v1964_v37 = vadd.f32 %v2515_v1, %v1352_v30 }
 0x285   : > { %2059 = vst [vmem:[%s3661_s22 + $0xa0] sm:$0xff] %v2027_v35  ;;  %v2028_v34 = vmax.f32 %v1964_v37, 0.0  ;;  %v2516_v8 = vpop.f32.mrb[36].mxu1 }
 0x286   : > { %v2517_v38 = vpop.f32.mrb[37].mxu1 }
 0x287   : > { %2060 = vst [vmem:[%s3661_s22 + $0xa8] sm:$0xff] %v2028_v34  ;;  %v2518_v20 = vadd.f32 %v2517_v38, %v2516_v8  ;;  %v2519_v16 = vpop.f32.mrb[38].mxu1 }
 0x288   : > { %v2520_v28 = vpop.f32.mrb[39].mxu1 }
 0x289   : > { %v1969_v52 = vadd.f32 %v2518_v20, %v1353_v48  ;;  %v2521_v14 = vadd.f32 %v2520_v28, %v2519_v16 }
 0x28b   : > { %v2029_v21 = vmax.f32 %v1969_v52, 0.0  ;;  %v1972_v15 = vadd.f32 %v2521_v14, %v3751_v33 }
 0x28d   : > { %2061 = vst [vmem:[%s3661_s22 + $0xb0] sm:$0xff] %v2029_v21  ;;  %v2030_v50 = vmax.f32 %v1972_v15, 0.0  ;;  %v2522_v10 = vpop.f32.mrb[40].mxu1 }
 0x28e   : > { %v2523_v9 = vpop.f32.mrb[41].mxu1 }
 0x28f   : > { %2062 = vst [vmem:[%s3661_s22 + $0xb8] sm:$0xff] %v2030_v50  ;;  %v2524_v60 = vadd.f32 %v2523_v9, %v2522_v10  ;;  %v2525_v58 = vpop.f32.mrb[42].mxu1 }
 0x290   : > { %v2526_v57 = vpop.f32.mrb[43].mxu1 }
 0x291   : > { %v1977_v45 = vadd.f32 %v2524_v60, %v1355_v51  ;;  %v2527_v5 = vadd.f32 %v2526_v57, %v2525_v58 }
 0x293   : > { %v2031_v36 = vmax.f32 %v1977_v45, 0.0  ;;  %v1980_v48 = vadd.f32 %v2527_v5, %v3757_v56 }
 0x295   : > { %2063 = vst [vmem:[%s3661_s22 + $0xc0] sm:$0xff] %v2031_v36  ;;  %v2032_v32 = vmax.f32 %v1980_v48, 0.0  ;;  %v2528_v43 = vpop.f32.mrb[44].mxu1 }
 0x296   : > { %v2529_v33 = vpop.f32.mrb[45].mxu1 }
 0x297   : > { %2064 = vst [vmem:[%s3661_s22 + $0xc8] sm:$0xff] %v2032_v32  ;;  %v2530_v19 = vadd.f32 %v2529_v33, %v2528_v43  ;;  %v2531_v24 = vpop.f32.mrb[46].mxu1 }
 0x298   : > { %v2532_v53 = vpop.f32.mrb[47].mxu1 }
 0x299   : > { %v1985_v39 = vadd.f32 %v2530_v19, %v1357_v42  ;;  %v2533_v17 = vadd.f32 %v2532_v53, %v2531_v24 }
 0x29b   : > { %v2033_v61 = vmax.f32 %v1985_v39, 0.0  ;;  %v1988_v51 = vadd.f32 %v2533_v17, %v3763_v25 }
 0x29d   : > { %2065 = vst [vmem:[%s3661_s22 + $0xd0] sm:$0xff] %v2033_v61  ;;  %v2034_v4 = vmax.f32 %v1988_v51, 0.0  ;;  %v2534_v40 = vpop.f32.mrb[48].mxu1 }
 0x29e   : > { %v2535_v56 = vpop.f32.mrb[49].mxu1 }
 0x29f   : > { %2066 = vst [vmem:[%s3661_s22 + $0xd8] sm:$0xff] %v2034_v4  ;;  %v2536_v11 = vadd.f32 %v2535_v56, %v2534_v40  ;;  %v2537_v55 = vpop.f32.mrb[50].mxu1 }
 0x2a0   : > { %v2538_v22 = vpop.f32.mrb[51].mxu1 }
 0x2a1   : > { %v1993_v7 = vadd.f32 %v2536_v11, %v1359_v23  ;;  %v2539_v26 = vadd.f32 %v2538_v22, %v2537_v55 }
 0x2a3   : > { %v2035_v18 = vmax.f32 %v1993_v7, 0.0  ;;  %v1996_v42 = vadd.f32 %v2539_v26, %v3771_v44 }
 0x2a5   : > { %2067 = vst [vmem:[%s3661_s22 + $0xe0] sm:$0xff] %v2035_v18  ;;  %v2036_v27 = vmax.f32 %v1996_v42, 0.0  ;;  %v2540_v25 = vpop.f32.mrb[52].mxu1 }
 0x2a6   : > { %v2541_v3 = vpop.f32.mrb[53].mxu1 }
 0x2a7   : > { %2068 = vst [vmem:[%s3661_s22 + $0xe8] sm:$0xff] %v2036_v27  ;;  %v2542_v63 = vadd.f32 %v2541_v3, %v2540_v25  ;;  %v2543_v0 = vpop.f32.mrb[54].mxu1 }
 0x2a8   : > { %v2544_v62 = vpop.f32.mrb[55].mxu1 }
 0x2a9   : > { %v2001_v59 = vadd.f32 %v2542_v63, %v3782_v13  ;;  %v2545_v2 = vadd.f32 %v2544_v62, %v2543_v0 }
 0x2ab   : > { %v2037_v23 = vmax.f32 %v2001_v59, 0.0  ;;  %v2004_v44 = vadd.f32 %v2545_v2, %v3778_v47 }
 0x2ad   : > { %2069 = vst [vmem:[%s3661_s22 + $0xf0] sm:$0xff] %v2037_v23  ;;  %v2038_v12 = vmax.f32 %v2004_v44, 0.0 }
 0x2af   : > { %2070 = vst [vmem:[%s3661_s22 + $0xf8] sm:$0xff] %v2038_v12 }
 0x2b0   : > { %2799 = shalt.err (!%p2796_p3)
}
 0x2b1   : > { %s2800_s18 = scalar_lea.hbm %s3806_s10, 4096  ;;  %s2804_s22 = scalar_lea.hbm %s3863_s8, 8192 }
 0x2b2   : > { %p2801_p4 = scmp.ne.s32.totalorder %s3806_s10, %s2800_s18  ;;  %p2805_p9 = scmp.lt.u32.totalorder %s3806_s10, %s3863_s8 }
 0x2b3   : > { %p2806_p10 = scmp.lt.u32.totalorder %s2804_s22, %s2800_s18  ;;  %p2808_p12 = scmp.lt.u32.totalorder %s2800_s18, %s3806_s10 }
 0x2b4   : > { %p2802_p7 = pnand %p2801_p4, %p2939_p5 }
 0x2b5   : > { %p2807_p11 = por %p2806_p10, %p2805_p9 }
 0x2b6   : > { %p2803_p8 = pneg %p2802_p7 }
 0x2b7   : > { %p2809_p13 = por %p2808_p12, %p2807_p11 }
 0x2b9   : > { %p2810_p0 = pnand %p2809_p13, %p2803_p8 }
 0x2bb   : > { %2813 = shalt.err (!%p2810_p0)
}
 0x2bc   : > { %s2854_s26 = smov 128   ;;  %s2855_s9 = smov 8  }
 0x2bd   : > { %2724 = dma.vmem_to_hbm [thread:$0]  (%p2939_p5), %s3808_s24, 4096, %s3806_s10, %s3814_s12, %s2854_s26, %s2854_s26, %s2855_s9  }
 0x2be PF: > { %p2730_p1 = scmp.ge.s32.totalorder %s2848_s30, 2  ;;  %s2100_s13 = sand.u32 1, %s2836_s27  }
 0x2bf   : > { %s2101_s17 = scalar_lea.sflag [#allocation3], %s2100_s13 }
 0x2c0   : > { %p2727_p2 = pnand %p2730_p1, %p2943_p6 }
 0x2c2   : > { %2831 = dma.done.wait (!%p2727_p2), %s2101_s17, 4096  }
 0x2c3   : > { %2833 = vsyncadd (!%p2727_p2), %s2101_s17, 4294963200  ;;  %p18_p3 = scmp.ge.s32.totalorder %s2926_s11, 4   ;;  %s3892_s27 = smov %s2840_s28 }
 0x2c4   : > { %s3893_s28 = smov %s2844_s29  ;;  %s3894_s29 = smov %s2937_s14 }
 0x2c5   : > { %s3895_s30 = smov %s2926_s11  ;;  %20 = sbr.rel (!%p18_p3) target bundleno = 3 (0x3), region = 90 }
 0x2cc   :  { %2106 = vsyncpa [#allocation3], 1 }
 0x2cd   :  { %2108 = vsyncpa [#allocation3 + $0x1], 1 }

</bundles_post_ra>
